<compile_context>
chip_gen: v7x
topology: tpu7x:2x2x1
jax: 0.10.0
libtpu: 0.0.40
codegen_flags: <defaults>
</compile_context>

<pallas_src>
import jax
import jax.numpy as jnp
from jax.experimental import pallas as pl
from jax.experimental.pallas import tpu as pltpu

# Logical sizes (PyTorch module).
IN_F = 2400
H1_F = 1000
H2_F = 10
OUT_F = 1

# Padded / tiled sizes.
IN_FP = 2560            # 2400 (+1 bias element) padded up to 20 * 128
H1P = 1024              # 1000 padded to 8 * 128
TK = 640                # K-tile for layer 1 (5 * 128); grid = 2560 / 640 = 4
H2P = 16                # 10 padded to 16 sublanes (rows of W2^T)
SLAB_C = H1P + 128      # 1152 lanes: [ W2^T | b2/w3/b3 columns | zero pad ]
COL_B2 = H1P            # lane holding b2 (row 10 holds the constant 1.0)
COL_W3 = H1P + 1        # lane holding w3 (row 10 holds b3)


def _ffnn_kernel(x_ref, w1_ref, slab_ref, o_ref, acc_ref):
    k = pl.program_id(0)

    @pl.when(k == 0)
    def _():
        acc_ref[...] = jnp.zeros_like(acc_ref)

    # Partial layer 1: (1, TK) bf16 @ (TK, 1024) bf16 -> f32 accumulator.
    # b1 is already folded into W1 (x carries a 1.0 at position IN_F).
    acc_ref[...] += jnp.dot(
        x_ref[...], w1_ref[...], preferred_element_type=jnp.float32
    )

    @pl.when(k == pl.num_programs(0) - 1)
    def _():
        h1 = jnp.maximum(acc_ref[...], 0.0)                  # (1, 1024) f32

        # Packed small params (single f32 slab, (16, 1152)):
        #   lanes [0:1024)  -> W2^T padded (rows 0..9 real, 10..15 zero)
        #   lane  1024      -> b2 per row; row 10 == 1.0 (bias trick for b3)
        #   lane  1025      -> w3 per row; row 10 == b3
        w2t = slab_ref[:, 0:H1P]                             # (16, 1024)
        b2c = slab_ref[:, COL_B2:COL_B2 + 1]                 # (16, 1)
        w3c = slab_ref[:, COL_W3:COL_W3 + 1]                 # (16, 1)

        # Layer 2 on VPU + XLU: per-row dot(h1, W2^T[j]) via mult + lane reduce.
        h2 = jnp.sum(w2t * h1, axis=-1, keepdims=True) + b2c  # (16, 1)
        h2 = jnp.maximum(h2, 0.0)                            # row 10 == 1.0

        # Layer 3: sublane reduce; b3 rides on row 10 of w3c.
        y = jnp.sum(h2 * w3c, axis=0, keepdims=True)         # (1, 1)
        o_ref[...] = y.astype(o_ref.dtype)


_COST = pl.CostEstimate(
    flops=2 * IN_FP * H1P + 2 * H2P * H1P + 2 * H2P,
    transcendentals=0,
    bytes_accessed=IN_FP * H1P * 2 + H2P * SLAB_C * 4 + IN_FP * 2 + OUT_F * 4,
)

_ffnn_call = pl.pallas_call(
    _ffnn_kernel,
    out_shape=jax.ShapeDtypeStruct((1, OUT_F), jnp.float32),
    grid_spec=pltpu.PrefetchScalarGridSpec(
        num_scalar_prefetch=0,
        grid=(IN_FP // TK,),
        in_specs=[
            pl.BlockSpec((1, TK), lambda k: (0, k)),           # x stream
            pl.BlockSpec((TK, H1P), lambda k: (k, 0)),         # W1 stream (bf16)
            pl.BlockSpec((H2P, SLAB_C), lambda k: (0, 0)),     # small-param slab
        ],
        out_specs=pl.BlockSpec((1, OUT_F), lambda k: (0, 0)),
        scratch_shapes=[pltpu.VMEM((1, H1P), jnp.float32)],
    ),
    compiler_params=pltpu.CompilerParams(
        dimension_semantics=("arbitrary",),
        vmem_limit_bytes=16 << 20,
    ),
    cost_estimate=_COST,
)


@jax.jit
def feedforward_nn(x, packed):
    """x: any array with 2400 elements (mirrors torch's x.reshape((1, 2400)))."""
    w1_bf16, slab = packed
    x2d = jnp.reshape(x, (1, IN_F)).astype(jnp.bfloat16)
    xp = jnp.concatenate(
        [
            x2d,
            jnp.ones((1, 1), jnp.bfloat16),                   # hits the b1 row of W1
            jnp.zeros((1, IN_FP - IN_F - 1), jnp.bfloat16),   # zero padding
        ],
        axis=1,
    )
    return _ffnn_call(xp, w1_bf16, slab)


def init_params(key):
    """Deterministic init mimicking nn.Linear's default U(-1/sqrt(fan_in), 1/sqrt(fan_in)).

    Weights stored as (in_features, out_features) == torch weight.T.
    """
    def linear(key, fan_in, fan_out):
        kw, kb = jax.random.split(key)
        bound = 1.0 / jnp.sqrt(jnp.float32(fan_in))
        w = jax.random.uniform(kw, (fan_in, fan_out), jnp.float32, -bound, bound)
        b = jax.random.uniform(kb, (1, fan_out), jnp.float32, -bound, bound)
        return w, b

    k1, k2, k3 = jax.random.split(key, 3)
    w1, b1 = linear(k1, IN_F, H1_F)
    w2, b2 = linear(k2, H1_F, H2_F)
    w3, b3 = linear(k3, H2_F, OUT_F)
    return (w1, b1, w2, b2, w3, b3)


def pack_params(params):
    """Pad / pack raw f32 params into the kernel's streaming-friendly layout."""
    w1, b1, w2, b2, w3, b3 = params

    # W1: (2560, 1024) bf16, with b1 folded in as row IN_F (x carries a 1.0 there).
    w1p = jnp.zeros((IN_FP, H1P), jnp.float32)
    w1p = w1p.at[:IN_F, :H1_F].set(w1)
    w1p = w1p.at[IN_F, :H1_F].set(b1[0])
    w1_bf16 = w1p.astype(jnp.bfloat16)

    # Small-params slab: (16, 1152) f32.
    slab = jnp.zeros((H2P, SLAB_C), jnp.float32)
    slab = slab.at[:H2_F, :H1_F].set(w2.T)           # W2^T padded
    slab = slab.at[:H2_F, COL_B2].set(b2[0])         # b2 column
    slab = slab.at[H2_F, COL_B2].set(1.0)            # constant-1 row -> carries b3
    slab = slab.at[:H2_F, COL_W3].set(w3[:, 0])      # w3 column
    slab = slab.at[H2_F, COL_W3].set(b3[0, 0])       # b3 folded into the reduce
    return w1_bf16, slab


def _reference(x, params):
    """f32 reference applying the same bf16 rounding to layer-1 operands."""
    w1, b1, w2, b2, w3, b3 = params
    xr = jnp.reshape(x, (1, IN_F)).astype(jnp.bfloat16).astype(jnp.float32)
    w1r = w1.astype(jnp.bfloat16).astype(jnp.float32)
    b1r = b1.astype(jnp.bfloat16).astype(jnp.float32)
    h = jnp.maximum(xr @ w1r + b1r, 0.0)
    h = jnp.maximum(h @ w2 + b2, 0.0)
    return h @ w3 + b3


if __name__ == "__main__":
    key = jax.random.PRNGKey(0)
    kp, kx = jax.random.split(key)
    params = init_params(kp)
    packed = pack_params(params)

    # Input with 2400 elements (torch forward reshapes whatever it gets to (1, 2400)).
    x = jax.random.normal(kx, (1, 2400), dtype=jnp.float32)

    out = jax.block_until_ready(feedforward_nn(x, packed))
    ref = jax.block_until_ready(_reference(x, params))

    assert out.shape == (1, OUT_F), out.shape
    assert jnp.allclose(out, ref, atol=1e-3, rtol=1e-3), (out, ref)
    print("KERNEL_OK")
</pallas_src>

<mosaic_0001>
module attributes {stable_mosaic.version = 11 : i64} {
  func.func @_ffnn_kernel(%arg0: i32, %arg1: memref<1x640xbf16, #tpu.memory_space<vmem>>, %arg2: memref<640x1024xbf16, #tpu.memory_space<vmem>>, %arg3: memref<16x1152xf32, #tpu.memory_space<vmem>>, %arg4: memref<1x1xf32, #tpu.memory_space<vmem>>, %arg5: memref<1x1024xf32, #tpu.memory_space<vmem>>) attributes {dimension_semantics = [#tpu.dimension_semantics<arbitrary>], iteration_bounds = array<i64: 4>, scalar_prefetch = 0 : i64, scratch_operands = 1 : i64, tpu.core_type = #tpu.core_type<tc>, window_params = [{transform_indices = @transform_0, window_bounds = array<i64: 1, 640>}, {transform_indices = @transform_1, window_bounds = array<i64: 640, 1024>}, {pipeline_mode = #tpu.pipeline_mode<synchronous>, transform_indices = @transform_2, window_bounds = array<i64: 16, 1152>}, {pipeline_mode = #tpu.pipeline_mode<synchronous>, transform_indices = @transform_3, window_bounds = array<i64: 1, 1>}]} {
    %c0_i32 = arith.constant 0 : i32
    %0 = arith.cmpi eq, %arg0, %c0_i32 : i32
    %1 = arith.extui %0 : i1 to i32
    %c0_i32_0 = arith.constant 0 : i32
    %2 = arith.cmpi ne, %1, %c0_i32_0 : i32
    scf.if %2 {
      %cst_9 = arith.constant 0.000000e+00 : f32
      %12 = vector.broadcast %cst_9 : f32 to vector<1x1024xf32>
      %c0_10 = arith.constant 0 : index
      %c0_11 = arith.constant 0 : index
      %13 = vector.load %arg5[%c0_10, %c0_11] : memref<1x1024xf32, #tpu.memory_space<vmem>>, vector<1x1024xf32>
      tpu.vector_store %arg5[%c0_10, %c0_11], %12 {strides = array<i32>} : memref<1x1024xf32, #tpu.memory_space<vmem>>, vector<1x1024xf32>,
    } else {
    }
    %c0 = arith.constant 0 : index
    %c0_1 = arith.constant 0 : index
    %3 = vector.load %arg5[%c0, %c0_1] : memref<1x1024xf32, #tpu.memory_space<vmem>>, vector<1x1024xf32>
    %c0_2 = arith.constant 0 : index
    %c0_3 = arith.constant 0 : index
    %4 = vector.load %arg1[%c0_2, %c0_3] : memref<1x640xbf16, #tpu.memory_space<vmem>>, vector<1x640xbf16>
    %c0_4 = arith.constant 0 : index
    %c0_5 = arith.constant 0 : index
    %5 = vector.load %arg2[%c0_4, %c0_5] : memref<640x1024xbf16, #tpu.memory_space<vmem>>, vector<640x1024xbf16>
    %cst = arith.constant dense<0.000000e+00> : vector<1x1024xf32>
    %6 = tpu.matmul %4, %5, %cst {dimension_numbers = #tpu.dot_dimension_numbers<[1], [0], [0], [1], [0, 0, 1, 1], [], []>} : vector<1x640xbf16>, vector<640x1024xbf16>, vector<1x1024xf32> -> vector<1x1024xf32>
    %7 = arith.addf %3, %6 : vector<1x1024xf32>
    %c0_6 = arith.constant 0 : index
    %c0_7 = arith.constant 0 : index
    %8 = vector.load %arg5[%c0_6, %c0_7] : memref<1x1024xf32, #tpu.memory_space<vmem>>, vector<1x1024xf32>
    tpu.vector_store %arg5[%c0_6, %c0_7], %7 {strides = array<i32>} : memref<1x1024xf32, #tpu.memory_space<vmem>>, vector<1x1024xf32>,
    %c3_i32 = arith.constant 3 : i32
    %9 = arith.cmpi eq, %arg0, %c3_i32 : i32
    %10 = arith.extui %9 : i1 to i32
    %c0_i32_8 = arith.constant 0 : i32
    %11 = arith.cmpi ne, %10, %c0_i32_8 : i32
    scf.if %11 {
      %c0_9 = arith.constant 0 : index
      %c0_10 = arith.constant 0 : index
      %12 = vector.load %arg5[%c0_9, %c0_10] : memref<1x1024xf32, #tpu.memory_space<vmem>>, vector<1x1024xf32>
      %cst_11 = arith.constant 0.000000e+00 : f32
      %13 = vector.broadcast %cst_11 : f32 to vector<1x1024xf32>
      %14 = arith.maximumf %12, %13 : vector<1x1024xf32>
      %c0_12 = arith.constant 0 : index
      %c0_13 = arith.constant 0 : index
      %15 = vector.load %arg3[%c0_12, %c0_13] : memref<16x1152xf32, #tpu.memory_space<vmem>>, vector<16x1024xf32>
      %c0_14 = arith.constant 0 : index
      %c1024 = arith.constant 1024 : index
      %16 = vector.load %arg3[%c0_14, %c1024] : memref<16x1152xf32, #tpu.memory_space<vmem>>, vector<16x1xf32>
      %c0_15 = arith.constant 0 : index
      %c1025 = arith.constant 1025 : index
      %17 = vector.load %arg3[%c0_15, %c1025] : memref<16x1152xf32, #tpu.memory_space<vmem>>, vector<16x1xf32>
      %18 = vector.broadcast %14 : vector<1x1024xf32> to vector<16x1024xf32>
      %19 = arith.mulf %15, %18 : vector<16x1024xf32>
      %cst_16 = arith.constant dense<0.000000e+00> : vector<16xf32>
      %20 = vector.multi_reduction <add>, %19, %cst_16 [1] : vector<16x1024xf32> to vector<16xf32>
      %21 = vector.shape_cast %20 : vector<16xf32> to vector<16x1xf32>
      %22 = arith.addf %21, %16 : vector<16x1xf32>
      %cst_17 = arith.constant 0.000000e+00 : f32
      %23 = vector.broadcast %cst_17 : f32 to vector<16x1xf32>
      %24 = arith.maximumf %22, %23 : vector<16x1xf32>
      %25 = arith.mulf %24, %17 : vector<16x1xf32>
      %cst_18 = arith.constant dense<0.000000e+00> : vector<1xf32>
      %26 = vector.multi_reduction <add>, %25, %cst_18 [0] : vector<16x1xf32> to vector<1xf32>
      %27 = vector.shape_cast %26 : vector<1xf32> to vector<1x1xf32>
      %c0_19 = arith.constant 0 : index
      %c0_20 = arith.constant 0 : index
      %28 = vector.load %arg4[%c0_19, %c0_20] : memref<1x1xf32, #tpu.memory_space<vmem>>, vector<1x1xf32>
      tpu.vector_store %arg4[%c0_19, %c0_20], %27 {strides = array<i32>} : memref<1x1xf32, #tpu.memory_space<vmem>>, vector<1x1xf32>,
    } else {
    }
    return
  }
  func.func @transform_0(%arg0: i32) -> (i32, i32) {
    %c0_i32 = arith.constant 0 : i32
    %c0_i32_0 = arith.constant 0 : i32
    return %c0_i32, %arg0 : i32, i32
  }
  func.func @transform_1(%arg0: i32) -> (i32, i32) {
    %c0_i32 = arith.constant 0 : i32
    %c0_i32_0 = arith.constant 0 : i32
    return %arg0, %c0_i32 : i32, i32
  }
  func.func @transform_2(%arg0: i32) -> (i32, i32) {
    %c0_i32 = arith.constant 0 : i32
    %c0_i32_0 = arith.constant 0 : i32
    %c0_i32_1 = arith.constant 0 : i32
    return %c0_i32, %c0_i32_0 : i32, i32
  }
  func.func @transform_3(%arg0: i32) -> (i32, i32) {
    %c0_i32 = arith.constant 0 : i32
    %c0_i32_0 = arith.constant 0 : i32
    %c0_i32_1 = arith.constant 0 : i32
    return %c0_i32, %c0_i32_0 : i32, i32
  }
}

</mosaic_0001>

<bundles_post_ra>
// kernel: feedforward_nn.1
= control target key start
LH: loop header
LB: loop body
LE: loop exit
PB: predicated region body
PF: predicated region fallthrough
CT: control target
= control target key end

     0   :  { %8 = vsyncpa [#allocation4], 0  ;;  %s4105_s0 = inlined_call_operand.vmem [shape: bf16[1,2560], index: 0, kind: input, shape index: {}]   ;;  %s4106_s1 = inlined_call_operand.hbm [shape: bf16[2560,1024], index: 1, kind: input, shape index: {}]   ;;  %s4107_s2 = inlined_call_operand.hbm [shape: f32[16,1152], index: 2, kind: input, shape index: {}]   ;;  %s4108_s3 = inlined_call_operand.hbm [shape: f32[1,1], index: 3, kind: output, shape index: {}]  }
   0x1   :  { %10 = vsyncpa [#allocation4 + $0x1], 0 }
   0x2   :  { %11 = vsyncpa [#allocation7], 0 }
   0x3   :  { %12 = vsyncpa [#allocation5], 0  ;;  %s3535_s12 = smov 0   ;;  %s3537_s13 = smov 0  }
   0x4   :  { %s3539_s14 = smov 0   ;;  %s3541_s15 = smov 0  }
   0x5 LB: > { %s3554_s16 = sadd.s32 4294967295, %s3502_s15   ;;  %p64_p0 = scmp.ne.s32.totalorder %s3494_s13, %s3490_s12  ;;  %s3502_s15 = sphi %s3541_s15, %s4124_s15   ;;  %s3498_s14 = sphi %s3539_s14, %s4123_s14   ;;  %s3494_s13 = sphi %s3537_s13, %s4122_s13   ;;  %s3490_s12 = sphi %s3535_s12, %s4121_s12  }
   0x6   : > { %p4109_p1 = scmp.eq.s32.totalorder %s3554_s16, 0  ;;  %p2940_p2 = scmp.ge.s32.totalorder %s3502_s15, 1 }
   0x7   : > { %p117_p3 = scmp.lt.s32.totalorder %s3502_s15, 5  ;;  %s3504_s19 = smov [#allocation6]  }
   0x8   : > { %p3563_p5 = por %p4109_p1, %p64_p0  ;;  %s129_s20 = sshll.u32 %s3504_s19, 4  ;;  %s130_s20 = int_to_ptr.vmem [resolvable:$true] %s129_s20 }
   0x9   : > { %p3567_p6 = pnand %p2940_p2, %p117_p3  ;;  %s3580_s22 = sadd.s32 1, %s3502_s15  }
   0xa   : > { %s4112_s17 = scalar_select %p3563_p5, 1, 0 }
   0xb   : > { %s4113_s18 = scalar_select %p3567_p6, 1, 0 }
   0xc   : > { %p3320_p7 = pneg %p3567_p6  ;;  %s51_s23 = sadd.s32 1, %s3498_s14 }
   0xd   : > { %s48_s24 = ssub.s32 %s3502_s15, %s3580_s22  ;;  %s3376_s27 = scalar_lea.hbm %s4107_s2, 2304 }
   0xe   : > { %p3575_p8 = pnand %p3320_p7, %p4109_p1  ;;  %p3377_p9 = scmp.ne.s32.totalorder %s4107_s2, %s3376_s27 }
   0xf   : > { %p3383_p13 = scmp.lt.u32.totalorder %s3376_s27, %s4107_s2 }
  0x10   : > { %p3378_p10 = pneg %p3575_p8 }
  0x12   : > { %p3379_p11 = pnand %p3378_p10, %p3377_p9 }
  0x14   : > { %p3380_p12 = pneg %p3379_p11 }
  0x16   : > { %p3385_p0 = pnand %p3383_p13, %p3380_p12 }
  0x18   : > { %3388 = shalt.err (!%p3385_p0)
}
  0x19   : > { %s3389_s5 = scalar_lea.vmem %s130_s20, 2304  ;;  %p3397_p4 = scmp.lt.s32.totalorder %s130_s20, %s130_s20 }
  0x1a   : > { %p3390_p2 = scmp.ne.s32.totalorder %s130_s20, %s3389_s5  ;;  %p3398_p1 = scmp.lt.s32.totalorder %s3389_s5, %s3389_s5 }
  0x1c   : > { %p3392_p3 = pnand %p3390_p2, %p3378_p10  ;;  %p3399_p5 = por %p3398_p1, %p3397_p4 }
  0x1e   : > { %p3393_p7 = pneg %p3392_p3 }
  0x20   : > { %p3400_p6 = pnand %p3399_p5, %p3393_p7 }
  0x22   : > { %3403 = shalt.err (!%p3400_p6)
}
  0x23   : > { %s3505_s6 = smov 1152   ;;  %s3506_s7 = smov 72  }
  0x24   : > { %3323 = dma.hbm_to_vmem [thread:$0]  (!%p3575_p8), %s4107_s2, 2304, %s130_s20, [#allocation7], %s3505_s6, %s3505_s6, %s3506_s7  }
  0x25   : > { %p49_p9 = scmp.eq.s32.totalorder %s48_s24, 0  ;;  %p58_p10 = scmp.ne.s32.totalorder %s3498_s14, %s3494_s13 }
  0x26   : > { %p59_p1 = scmp.eq.s32.totalorder %s3502_s15, 0  ;;  %p3329_p4 = scmp.lt.s32.totalorder %s3502_s15, 4 }
  0x27   : > { %s3606_s10 = scalar_select %p49_p9, %s3498_s14, %s51_s23  }
  0x28   : > { %p60_p5 = por %p59_p1, %p58_p10  ;;  %s151_s11 = sand.u32 1, %s3498_s14  }
  0x29   : > { %s3308_s12 = smul.u32 2560, %s151_s11  ;;  %s3409_s30 = scalar_lea.hbm %s4106_s1, 163840 }
  0x2a   : > { %s3275_s19 = smul.u32 40960, %s3502_s15  ;;  %p3610_p6 = pnand %p3329_p4, %p60_p5 }
  0x2b   : > { %s155_s23 = scalar_lea.vmem [#allocation3], %s3308_s12  ;;  %s3621_s15 = scalar_lea.sflag [#allocation4], %s151_s11 }
  0x2c   : > { %s3617_s20 = scalar_lea.hbm %s4106_s1, %s3275_s19  ;;  %s163_s24 = sshll.u32 %s155_s23, 4  ;;  %s3619_s24 = int_to_ptr.vmem [resolvable:$true] %s163_s24 }
  0x2d   : > { %s3404_s27 = scalar_lea.hbm %s3617_s20, 40960  ;;  %p3406_p11 = pneg %p3610_p6 }
  0x2e   : > { %p3405_p8 = scmp.ne.s32.totalorder %s3617_s20, %s3404_s27  ;;  %p3410_p0 = scmp.lt.u32.totalorder %s3617_s20, %s4106_s1 }
  0x2f   : > { %p3411_p2 = scmp.lt.u32.totalorder %s3409_s30, %s3404_s27  ;;  %p3413_p7 = scmp.lt.u32.totalorder %s3404_s27, %s3617_s20 }
  0x30   : > { %p3407_p12 = pnand %p3406_p11, %p3405_p8 }
  0x31   : > { %p3412_p3 = por %p3411_p2, %p3410_p0 }
  0x32   : > { %p3408_p13 = pneg %p3407_p12 }
  0x33   : > { %p3414_p9 = por %p3413_p7, %p3412_p3 }
  0x35   : > { %p3415_p10 = pnand %p3414_p9, %p3408_p13 }
  0x37   : > { %3418 = shalt.err (!%p3415_p10)
}
  0x38   : > { %s3419_s6 = scalar_lea.vmem %s3619_s24, 40960  ;;  %s3507_s7 = smov [#allocation3]  }
  0x39   : > { %p3420_p1 = scmp.ne.s32.totalorder %s3619_s24, %s3419_s6  ;;  %s3424_s8 = sshll.u32 %s3507_s7, 4  ;;  %s3425_s8 = int_to_ptr.vmem [resolvable:$false] %s3424_s8 }
  0x3a   : > { %s3426_s9 = scalar_lea.vmem %s3425_s8, 81920  ;;  %p3427_p8 = scmp.lt.s32.totalorder %s3619_s24, %s3425_s8 }
  0x3b   : > { %p3422_p4 = pnand %p3420_p1, %p3406_p11  ;;  %p3428_p12 = scmp.lt.s32.totalorder %s3426_s9, %s3419_s6 }
  0x3d   : > { %p3423_p5 = pneg %p3422_p4  ;;  %p3429_p0 = por %p3428_p12, %p3427_p8 }
  0x3f   : > { %p3430_p2 = pnand %p3429_p0, %p3423_p5 }
  0x41   : > { %3433 = shalt.err (!%p3430_p2)
}
  0x42   : > { %s3508_s11 = smov 512   ;;  %s3509_s12 = smov 32  }
  0x43   : > { %3327 = dma.hbm_to_vmem [thread:$0]  (!%p3610_p6), %s3617_s20, 40960, %s3619_s24, %s3621_s15, %s3508_s11, %s3508_s11, %s3509_s12  }
  0x44   : > { %p4116_p11 = scmp.ne.s32.totalorder %s4113_s18, 0 }
  0x45   : > { %s177_s19 = sand.u32 (!%p4116_p11), 1, %s3494_s13   ;;  %p4117_p13 = scmp.ne.s32.totalorder (!%p4116_p11), %s4112_s17, 0 }
  0x46   : > { %175 = sbr.rel (%p4116_p11) target bundleno = 860 (0x35c), region = 32  ;;  %s178_s21 = scalar_lea.sflag (!%p4116_p11), [#allocation4], %s177_s19 }
  0x47   : > { %s3309_s26 = smul.u32 (!%p4116_p11), 2560, %s177_s19 }
  0x49   : > { %s3652_s23 = scalar_lea.vmem (!%p4116_p11), [#allocation3], %s3309_s26 }
  0x4d   : > { %3477 = dma.done.wait (%p4117_p13), %s178_s21, 40960  }
  0x4e   : > { %3479 = vsyncadd (%p4117_p13), %s178_s21, 4294926336  ;;  %p4118_p3 = scmp.eq.s32.totalorder %s3554_s16, 0 }
  0x50   : > { %3481 = dma.done.wait (%p4118_p3), [#allocation7], 2304   ;;  %p4119_p6 = pmov %p4118_p3 }
  0x51   : > { %s207_s18 = smul.u32 5, %s3554_s16  ;;  %p4120_p9 = scmp.ne.s32.totalorder %s3554_s16, 0 }
  0x52   : > { %3483 = vsyncadd (%p4119_p6), [#allocation7], 4294964992  ;;  %v3510_v0 = vmov (!%p4120_p9), 0.0  }
  0x53   : > { %p208_p7 = scmp.lt.s32.totalorder %s207_s18, 19  ;;  %217 = sbr.rel (%p4120_p9) target bundleno = 90 (0x5a), region = 44  ;;  %218 = vst [vmem:[#allocation2] sm:$0xff] (!%p4120_p9), %v3510_v0 }
  0x55   : > { %s4126_s18 = smov (!%p208_p7, %s207_s18), 19 }
  0x56   : > { %s210_s24 = scalar_lea.vmem %s4105_s0, %s4126_s18 }
  0x5a PF: > { %v221_v1 = vld [vmem:[%s3652_s23] sm:$0xff]  ;;  %v222_v3 = vld [vmem:[%s3652_s23 + $0x8] sm:$0xff]  ;;  %v3511_v33 = vmov 1966171168   ;;  %v546_v35 = vlaneseq  ;;  %p3268_p10 = scmp.ne.s32.totalorder %s3554_s16, 3 }
  0x5b   : > { %v225_v2 = vld [vmem:[%s3652_s23 + $0x20] sm:$0xff]  ;;  %v226_v5 = vld [vmem:[%s3652_s23 + $0x28] sm:$0xff]  ;;  %v544_v34 = vunpack.c.l.s4 %v3511_v33  ;;  %s3513_s27 = smov (!%p3268_p10), 127   ;;  %vm2851_vm0 = vcmask (!%p3268_p10), 7168   ;;  %vm2861_vm1 = vcmask (!%p3268_p10), 0  }
  0x5c   : > { %v2949_v4 = vcombine.high %v221_v1, %v225_v2  ;;  %v2948_v6 = vcombine.low %v221_v1, %v225_v2  ;;  %v229_v7 = vld [vmem:[%s3652_s23 + $0x40] sm:$0xff]  ;;  %v2951_v9 = vcombine.high %v222_v3, %v226_v5  ;;  %v2950_v10 = vcombine.low %v222_v3, %v226_v5  ;;  %v230_v12 = vld [vmem:[%s3652_s23 + $0x48] sm:$0xff] }
  0x5d   : > { %v233_v8 = vld [vmem:[%s3652_s23 + $0x60] sm:$0xff]  ;;  %v234_v13 = vld [vmem:[%s3652_s23 + $0x68] sm:$0xff]  ;;  %v545_v44 = vunpack.c.0.s8 %v544_v34  ;;  %v3693_v45 = vshrl.u32 %v546_v35, 7 }
  0x5e   : > { %v2957_v11 = vcombine.high %v229_v7, %v233_v8  ;;  %v237_v14 = vld [vmem:[%s3652_s23 + $0x80] sm:$0xff]  ;;  %2186 = vmatprep.subr.bf16.mxu0 %v2949_v4  ;;  %v2959_v15 = vcombine.high %v230_v12, %v234_v13  ;;  %v238_v17 = vld [vmem:[%s3652_s23 + $0x88] sm:$0xff]  ;;  %2309 = vmatprep.subr.bf16.mxu1 %v2951_v9  ;;  %v2956_v19 = vcombine.low %v229_v7, %v233_v8 }
  0x5f   : > { %v241_v16 = vld [vmem:[%s3652_s23 + $0xa0] sm:$0xff]  ;;  %v242_v18 = vld [vmem:[%s3652_s23 + $0xa8] sm:$0xff]  ;;  %2187 = vmatpush1.bf16.msra.mxu0 %v2948_v6  ;;  %2310 = vmatpush1.bf16.msra.mxu1 %v2950_v10  ;;  %v2958_v20 = vcombine.low %v230_v12, %v234_v13  ;;  %v3700_v54 = vsub.s32 %v545_v44, %v3693_v45 }
  0x60   : > { %2188 = vmatprep.subr.bf16.mxu0 %v2957_v11  ;;  %v2965_v21 = vcombine.high %v237_v14, %v241_v16  ;;  %2311 = vmatprep.subr.bf16.mxu1 %v2959_v15  ;;  %v2967_v22 = vcombine.high %v238_v17, %v242_v18  ;;  %v245_v23 = vld [vmem:[%s3652_s23 + $0xc0] sm:$0xff]  ;;  %v246_v25 = vld [vmem:[%s3652_s23 + $0xc8] sm:$0xff]  ;;  %v2964_v27 = vcombine.low %v237_v14, %v241_v16 }
  0x61   : > { %v249_v24 = vld [vmem:[%s3652_s23 + $0xe0] sm:$0xff]  ;;  %v250_v26 = vld [vmem:[%s3652_s23 + $0xe8] sm:$0xff]  ;;  %v2966_v28 = vcombine.low %v238_v17, %v242_v18 }
  0x62   : > { %v2973_v29 = vcombine.high %v245_v23, %v249_v24  ;;  %v2975_v30 = vcombine.high %v246_v25, %v250_v26  ;;  %v253_v31 = vld [vmem:[%s3652_s23 + $0x100] sm:$0xff]  ;;  %v254_v36 = vld [vmem:[%s3652_s23 + $0x108] sm:$0xff]  ;;  %v2972_v38 = vcombine.low %v245_v23, %v249_v24  ;;  %v2974_v39 = vcombine.low %v246_v25, %v250_v26 }
  0x63   : > { %2189 = vmatpush1.bf16.msra.mxu0 %v2956_v19  ;;  %2312 = vmatpush1.bf16.msra.mxu1 %v2958_v20  ;;  %v257_v32 = vld [vmem:[%s3652_s23 + $0x120] sm:$0xff]  ;;  %v258_v37 = vld [vmem:[%s3652_s23 + $0x128] sm:$0xff] }
  0x64   : > { %2190 = vmatprep.subr.bf16.mxu0 %v2965_v21  ;;  %2313 = vmatprep.subr.bf16.mxu1 %v2967_v22  ;;  %v2981_v40 = vcombine.high %v253_v31, %v257_v32  ;;  %v2983_v41 = vcombine.high %v254_v36, %v258_v37  ;;  %v261_v42 = vld [vmem:[%s3652_s23 + $0x140] sm:$0xff]  ;;  %v262_v46 = vld [vmem:[%s3652_s23 + $0x148] sm:$0xff]  ;;  %v2980_v48 = vcombine.low %v253_v31, %v257_v32 }
  0x65   : > { %v265_v43 = vld [vmem:[%s3652_s23 + $0x160] sm:$0xff]  ;;  %v266_v47 = vld [vmem:[%s3652_s23 + $0x168] sm:$0xff]  ;;  %v2982_v49 = vcombine.low %v254_v36, %v258_v37 }
  0x66   : > { %v2989_v50 = vcombine.high %v261_v42, %v265_v43  ;;  %v2991_v51 = vcombine.high %v262_v46, %v266_v47  ;;  %v269_v52 = vld [vmem:[%s3652_s23 + $0x180] sm:$0xff]  ;;  %v270_v55 = vld [vmem:[%s3652_s23 + $0x188] sm:$0xff]  ;;  %v2988_v57 = vcombine.low %v261_v42, %v265_v43  ;;  %v2990_v58 = vcombine.low %v262_v46, %v266_v47 }
  0x67   : > { %2191 = vmatpush1.bf16.msra.mxu0 %v2964_v27  ;;  %2314 = vmatpush1.bf16.msra.mxu1 %v2966_v28  ;;  %v273_v53 = vld [vmem:[%s3652_s23 + $0x1a0] sm:$0xff]  ;;  %v274_v56 = vld [vmem:[%s3652_s23 + $0x1a8] sm:$0xff] }
  0x68   : > { %2192 = vmatprep.subr.bf16.mxu0 %v2973_v29  ;;  %2315 = vmatprep.subr.bf16.mxu1 %v2975_v30  ;;  %v2997_v59 = vcombine.high %v269_v52, %v273_v53  ;;  %v3709_v60 = vld [vmem:[%s210_s24] sm:$0x1f]  ;;  %v2999_v61 = vcombine.high %v270_v55, %v274_v56  ;;  %v278_v1 = vld [vmem:[%s3652_s23 + $0x1c8] sm:$0xff]  ;;  %v2996_v3 = vcombine.low %v269_v52, %v273_v53 }
  0x69   : > { %v277_v62 = vld [vmem:[%s3652_s23 + $0x1c0] sm:$0xff]  ;;  %v3715_v0 = vrot.slane %v3709_v60, %v3700_v54  ;;  %v282_v2 = vld [vmem:[%s3652_s23 + $0x1e8] sm:$0xff]  ;;  %v2998_v5 = vcombine.low %v270_v55, %v274_v56 }
  0x6a   : > { %v281_v63 = vld [vmem:[%s3652_s23 + $0x1e0] sm:$0xff]  ;;  %v3007_v7 = vcombine.high %v278_v1, %v282_v2  ;;  %v286_v11 = vld [vmem:[%s3652_s23 + $0x208] sm:$0xff]  ;;  %v3006_v14 = vcombine.low %v278_v1, %v282_v2 }
  0x6b   : > { %2193 = vmatpush1.bf16.msra.mxu0 %v2972_v38  ;;  %2316 = vmatpush1.bf16.msra.mxu1 %v2974_v39  ;;  %v557_v4 = vcombine.high %v3715_v0, %v3715_v0  ;;  %v3005_v6 = vcombine.high %v277_v62, %v281_v63  ;;  %v285_v8 = vld [vmem:[%s3652_s23 + $0x200] sm:$0xff]  ;;  %v290_v12 = vld [vmem:[%s3652_s23 + $0x228] sm:$0xff]  ;;  %v3004_v13 = vcombine.low %v277_v62, %v281_v63 }
  0x6c   : > { %2194 = vmatprep.subr.bf16.mxu0 %v2981_v40  ;;  %2317 = vmatprep.subr.bf16.mxu1 %v2983_v41  ;;  %v289_v9 = vld [vmem:[%s3652_s23 + $0x220] sm:$0xff]  ;;  %v3015_v16 = vcombine.high %v286_v11, %v290_v12  ;;  %v294_v19 = vld [vmem:[%s3652_s23 + $0x248] sm:$0xff]  ;;  %v3014_v22 = vcombine.low %v286_v11, %v290_v12 }
  0x6d   : > { %v3724_v10 = vrot.slane %v557_v4, %v3700_v54  ;;  %v3013_v15 = vcombine.high %v285_v8, %v289_v9  ;;  %v293_v17 = vld [vmem:[%s3652_s23 + $0x240] sm:$0xff]  ;;  %v298_v20 = vld [vmem:[%s3652_s23 + $0x268] sm:$0xff]  ;;  %v3012_v21 = vcombine.low %v285_v8, %v289_v9 }
  0x6e   : > { %v297_v18 = vld [vmem:[%s3652_s23 + $0x260] sm:$0xff]  ;;  %v3023_v24 = vcombine.high %v294_v19, %v298_v20  ;;  %v302_v27 = vld [vmem:[%s3652_s23 + $0x288] sm:$0xff]  ;;  %v3022_v30 = vcombine.low %v294_v19, %v298_v20 }
  0x6f   : > { %2195 = vmatpush1.bf16.msra.mxu0 %v2980_v48  ;;  %2318 = vmatpush1.bf16.msra.mxu1 %v2982_v49  ;;  %v3021_v23 = vcombine.high %v293_v17, %v297_v18  ;;  %v301_v25 = vld [vmem:[%s3652_s23 + $0x280] sm:$0xff]  ;;  %v306_v28 = vld [vmem:[%s3652_s23 + $0x2a8] sm:$0xff]  ;;  %v3020_v29 = vcombine.low %v293_v17, %v297_v18 }
  0x70   : > { %2196 = vmatprep.subr.bf16.mxu0 %v2989_v50  ;;  %2319 = vmatprep.subr.bf16.mxu1 %v2991_v51  ;;  %v305_v26 = vld [vmem:[%s3652_s23 + $0x2a0] sm:$0xff]  ;;  %v3031_v32 = vcombine.high %v302_v27, %v306_v28  ;;  %v310_v35 = vld [vmem:[%s3652_s23 + $0x2c8] sm:$0xff]  ;;  %v3030_v38 = vcombine.low %v302_v27, %v306_v28 }
  0x71   : > { %2218 = vmatprep.mubr.bf16.mxu0 %v3724_v10  ;;  %2341 = vmatprep.mubr.bf16.mxu1 %v3724_v10  ;;  %v3029_v31 = vcombine.high %v301_v25, %v305_v26  ;;  %v309_v33 = vld [vmem:[%s3652_s23 + $0x2c0] sm:$0xff]  ;;  %v314_v36 = vld [vmem:[%s3652_s23 + $0x2e8] sm:$0xff]  ;;  %v3028_v37 = vcombine.low %v301_v25, %v305_v26 }
  0x72   : > { %v313_v34 = vld [vmem:[%s3652_s23 + $0x2e0] sm:$0xff]  ;;  %v3039_v40 = vcombine.high %v310_v35, %v314_v36  ;;  %v318_v43 = vld [vmem:[%s3652_s23 + $0x308] sm:$0xff]  ;;  %v3038_v47 = vcombine.low %v310_v35, %v314_v36 }
  0x73   : > { %2197 = vmatpush1.bf16.msra.mxu0 %v2988_v57  ;;  %2320 = vmatpush1.bf16.msra.mxu1 %v2990_v58  ;;  %v3037_v39 = vcombine.high %v309_v33, %v313_v34  ;;  %v317_v41 = vld [vmem:[%s3652_s23 + $0x300] sm:$0xff]  ;;  %v322_v44 = vld [vmem:[%s3652_s23 + $0x328] sm:$0xff]  ;;  %v3036_v46 = vcombine.low %v309_v33, %v313_v34  ;;  %v3774_v33 = vcombine.high %v3724_v10, %v3724_v10 }
  0x74   : > { %2198 = vmatprep.subr.bf16.mxu0 %v2997_v59  ;;  %2321 = vmatprep.subr.bf16.mxu1 %v2999_v61  ;;  %v321_v42 = vld [vmem:[%s3652_s23 + $0x320] sm:$0xff]  ;;  %v3047_v49 = vcombine.high %v318_v43, %v322_v44  ;;  %v326_v52 = vld [vmem:[%s3652_s23 + $0x348] sm:$0xff]  ;;  %v3046_v56 = vcombine.low %v318_v43, %v322_v44 }
  0x75   : > { %v3045_v48 = vcombine.high %v317_v41, %v321_v42  ;;  %v325_v50 = vld [vmem:[%s3652_s23 + $0x340] sm:$0xff]  ;;  %v330_v53 = vld [vmem:[%s3652_s23 + $0x368] sm:$0xff]  ;;  %v3044_v55 = vcombine.low %v317_v41, %v321_v42 }
  0x76   : > { %v329_v51 = vld [vmem:[%s3652_s23 + $0x360] sm:$0xff]  ;;  %v3055_v58 = vcombine.high %v326_v52, %v330_v53  ;;  %v334_v62 = vld [vmem:[%s3652_s23 + $0x388] sm:$0xff]  ;;  %v3054_v2 = vcombine.low %v326_v52, %v330_v53 }
  0x77   : > { %2199 = vmatpush1.bf16.msra.mxu0 %v2996_v3  ;;  %2322 = vmatpush1.bf16.msra.mxu1 %v2998_v5  ;;  %v3053_v57 = vcombine.high %v325_v50, %v329_v51  ;;  %v333_v59 = vld [vmem:[%s3652_s23 + $0x380] sm:$0xff]  ;;  %v338_v63 = vld [vmem:[%s3652_s23 + $0x3a8] sm:$0xff]  ;;  %v3052_v1 = vcombine.low %v325_v50, %v329_v51 }
  0x78   : > { %2200 = vmatprep.subr.bf16.mxu0 %v3005_v6  ;;  %2323 = vmatprep.subr.bf16.mxu1 %v3007_v7  ;;  %v337_v61 = vld [vmem:[%s3652_s23 + $0x3a0] sm:$0xff]  ;;  %v3063_v4 = vcombine.high %v334_v62, %v338_v63  ;;  %v342_v7 = vld [vmem:[%s3652_s23 + $0x3c8] sm:$0xff]  ;;  %v3062_v11 = vcombine.low %v334_v62, %v338_v63 }
  0x79   : > { %v3061_v3 = vcombine.high %v333_v59, %v337_v61  ;;  %v341_v5 = vld [vmem:[%s3652_s23 + $0x3c0] sm:$0xff]  ;;  %v346_v8 = vld [vmem:[%s3652_s23 + $0x3e8] sm:$0xff]  ;;  %v3060_v9 = vcombine.low %v333_v59, %v337_v61 }
  0x7a   : > { %v345_v6 = vld [vmem:[%s3652_s23 + $0x3e0] sm:$0xff]  ;;  %v354_v17 = vld [vmem:[%s3652_s23 + $0x428] sm:$0xff]  ;;  %v3070_v19 = vcombine.low %v342_v7, %v346_v8 }
  0x7b   : > { %2201 = vmatpush1.bf16.msra.mxu0 %v3004_v13  ;;  %2324 = vmatpush1.bf16.msra.mxu1 %v3006_v14  ;;  %v3069_v12 = vcombine.high %v341_v5, %v345_v6  ;;  %v3071_v13 = vcombine.high %v342_v7, %v346_v8  ;;  %v349_v14 = vld [vmem:[%s3652_s23 + $0x400] sm:$0xff]  ;;  %v3068_v18 = vcombine.low %v341_v5, %v345_v6  ;;  %v358_v25 = vld [vmem:[%s3652_s23 + $0x448] sm:$0xff] }
  0x7c   : > { %2202 = vmatprep.subr.bf16.mxu0 %v3013_v15  ;;  %2325 = vmatprep.subr.bf16.mxu1 %v3015_v16  ;;  %v353_v15 = vld [vmem:[%s3652_s23 + $0x420] sm:$0xff]  ;;  %v350_v16 = vld [vmem:[%s3652_s23 + $0x408] sm:$0xff] }
  0x7d   : > { %v3077_v20 = vcombine.high %v349_v14, %v353_v15  ;;  %v362_v26 = vld [vmem:[%s3652_s23 + $0x468] sm:$0xff]  ;;  %v3076_v27 = vcombine.low %v349_v14, %v353_v15  ;;  %v3078_v28 = vcombine.low %v350_v16, %v354_v17 }
  0x7e   : > { %v370_v34 = vld [vmem:[%s3652_s23 + $0x4a8] sm:$0xff]  ;;  %v3086_v36 = vcombine.low %v358_v25, %v362_v26 }
  0x7f   : > { %2203 = vmatpush1.bf16.msra.mxu0 %v3012_v21  ;;  %2326 = vmatpush1.bf16.msra.mxu1 %v3014_v22  ;;  %v3079_v21 = vcombine.high %v350_v16, %v354_v17  ;;  %v357_v22 = vld [vmem:[%s3652_s23 + $0x440] sm:$0xff]  ;;  %v374_v41 = vld [vmem:[%s3652_s23 + $0x4c8] sm:$0xff] }
  0x80   : > { %2204 = vmatprep.subr.bf16.mxu0 %v3021_v23  ;;  %2327 = vmatprep.subr.bf16.mxu1 %v3023_v24  ;;  %v361_v23 = vld [vmem:[%s3652_s23 + $0x460] sm:$0xff]  ;;  %v3766_v24 = vrot.slane %v3715_v0, %v3700_v54  ;;  %v366_v0 = vld [vmem:[%s3652_s23 + $0x488] sm:$0xff] }
  0x81   : > { %v3084_v35 = vcombine.low %v357_v22, %v361_v23  ;;  %v378_v42 = vld [vmem:[%s3652_s23 + $0x4e8] sm:$0xff]  ;;  %v3094_v44 = vcombine.low %v366_v0, %v370_v34 }
  0x82   : > { %v382_v50 = vld [vmem:[%s3652_s23 + $0x508] sm:$0xff]  ;;  %v3102_v53 = vcombine.low %v374_v41, %v378_v42 }
  0x83   : > { %2205 = vmatpush1.bf16.msra.mxu0 %v3020_v29  ;;  %2328 = vmatpush1.bf16.msra.mxu1 %v3022_v30  ;;  %v3085_v29 = vcombine.high %v357_v22, %v361_v23  ;;  %v3087_v30 = vcombine.high %v358_v25, %v362_v26  ;;  %v386_v51 = vld [vmem:[%s3652_s23 + $0x528] sm:$0xff] }
  0x84   : > { %2206 = vmatprep.subr.bf16.mxu0 %v3029_v31  ;;  %2329 = vmatprep.subr.bf16.mxu1 %v3031_v32  ;;  %v365_v31 = vld [vmem:[%s3652_s23 + $0x480] sm:$0xff]  ;;  %v390_v59 = vld [vmem:[%s3652_s23 + $0x548] sm:$0xff]  ;;  %v3110_v63 = vcombine.low %v382_v50, %v386_v51 }
  0x85   : > { %v369_v32 = vld [vmem:[%s3652_s23 + $0x4a0] sm:$0xff]  ;;  %v394_v61 = vld [vmem:[%s3652_s23 + $0x568] sm:$0xff] }
  0x86   : > { %v3092_v43 = vcombine.low %v365_v31, %v369_v32  ;;  %v398_v5 = vld [vmem:[%s3652_s23 + $0x588] sm:$0xff]  ;;  %v3118_v8 = vcombine.low %v390_v59, %v394_v61 }
  0x87   : > { %2207 = vmatpush1.bf16.msra.mxu0 %v3028_v37  ;;  %2330 = vmatpush1.bf16.msra.mxu1 %v3030_v38  ;;  %v3093_v37 = vcombine.high %v365_v31, %v369_v32  ;;  %v3095_v38 = vcombine.high %v366_v0, %v370_v34  ;;  %v402_v6 = vld [vmem:[%s3652_s23 + $0x5a8] sm:$0xff] }
  0x88   : > { %2208 = vmatprep.subr.bf16.mxu0 %v3037_v39  ;;  %2331 = vmatprep.subr.bf16.mxu1 %v3039_v40  ;;  %v373_v39 = vld [vmem:[%s3652_s23 + $0x4c0] sm:$0xff]  ;;  %v406_v14 = vld [vmem:[%s3652_s23 + $0x5c8] sm:$0xff]  ;;  %v3126_v17 = vcombine.low %v398_v5, %v402_v6 }
  0x89   : > { %v377_v40 = vld [vmem:[%s3652_s23 + $0x4e0] sm:$0xff]  ;;  %v410_v15 = vld [vmem:[%s3652_s23 + $0x5e8] sm:$0xff] }
  0x8a   : > { %v3100_v52 = vcombine.low %v373_v39, %v377_v40  ;;  %v414_v22 = vld [vmem:[%s3652_s23 + $0x608] sm:$0xff]  ;;  %v3134_v26 = vcombine.low %v406_v14, %v410_v15 }
  0x8b   : > { %2209 = vmatpush1.bf16.msra.mxu0 %v3036_v46  ;;  %2332 = vmatpush1.bf16.msra.mxu1 %v3038_v47  ;;  %v3101_v46 = vcombine.high %v373_v39, %v377_v40  ;;  %v3103_v47 = vcombine.high %v374_v41, %v378_v42  ;;  %v418_v23 = vld [vmem:[%s3652_s23 + $0x628] sm:$0xff] }
  0x8c   : > { %2210 = vmatprep.subr.bf16.mxu0 %v3045_v48  ;;  %2333 = vmatprep.subr.bf16.mxu1 %v3047_v49  ;;  %v381_v48 = vld [vmem:[%s3652_s23 + $0x500] sm:$0xff]  ;;  %v422_v31 = vld [vmem:[%s3652_s23 + $0x648] sm:$0xff]  ;;  %v3142_v34 = vcombine.low %v414_v22, %v418_v23 }
  0x8d   : > { %v385_v49 = vld [vmem:[%s3652_s23 + $0x520] sm:$0xff]  ;;  %v426_v32 = vld [vmem:[%s3652_s23 + $0x668] sm:$0xff] }
  0x8e   : > { %v3108_v62 = vcombine.low %v381_v48, %v385_v49  ;;  %v430_v39 = vld [vmem:[%s3652_s23 + $0x688] sm:$0xff]  ;;  %v3150_v42 = vcombine.low %v422_v31, %v426_v32 }
  0x8f   : > { %2211 = vmatpush1.bf16.msra.mxu0 %v3044_v55  ;;  %2334 = vmatpush1.bf16.msra.mxu1 %v3046_v56  ;;  %v3109_v55 = vcombine.high %v381_v48, %v385_v49  ;;  %v3111_v56 = vcombine.high %v382_v50, %v386_v51  ;;  %v434_v40 = vld [vmem:[%s3652_s23 + $0x6a8] sm:$0xff] }
  0x90   : > { %2212 = vmatprep.subr.bf16.mxu0 %v3053_v57  ;;  %2335 = vmatprep.subr.bf16.mxu1 %v3055_v58  ;;  %v389_v57 = vld [vmem:[%s3652_s23 + $0x540] sm:$0xff]  ;;  %v438_v48 = vld [vmem:[%s3652_s23 + $0x6c8] sm:$0xff]  ;;  %v3158_v51 = vcombine.low %v430_v39, %v434_v40 }
  0x91   : > { %v393_v58 = vld [vmem:[%s3652_s23 + $0x560] sm:$0xff]  ;;  %v442_v49 = vld [vmem:[%s3652_s23 + $0x6e8] sm:$0xff] }
  0x92   : > { %v3116_v7 = vcombine.low %v389_v57, %v393_v58 }
  0x93   : > { %2213 = vmatpush1.bf16.msra.mxu0 %v3052_v1  ;;  %2336 = vmatpush1.bf16.msra.mxu1 %v3054_v2  ;;  %v3117_v1 = vcombine.high %v389_v57, %v393_v58  ;;  %v3119_v2 = vcombine.high %v390_v59, %v394_v61  ;;  %v446_v57 = vld [vmem:[%s3652_s23 + $0x708] sm:$0xff]  ;;  %v3166_v61 = vcombine.low %v438_v48, %v442_v49 }
  0x94   : > { %2214 = vmatprep.subr.bf16.mxu0 %v3061_v3  ;;  %2337 = vmatprep.subr.bf16.mxu1 %v3063_v4  ;;  %v397_v3 = vld [vmem:[%s3652_s23 + $0x580] sm:$0xff]  ;;  %v450_v58 = vld [vmem:[%s3652_s23 + $0x728] sm:$0xff] }
  0x95   : > { %v401_v4 = vld [vmem:[%s3652_s23 + $0x5a0] sm:$0xff] }
  0x96   : > { %v3124_v16 = vcombine.low %v397_v3, %v401_v4 }
  0x97   : > { %2215 = vmatpush1.bf16.msra.mxu0 %v3060_v9  ;;  %2338 = vmatpush1.bf16.msra.mxu1 %v3062_v11  ;;  %v3125_v9 = vcombine.high %v397_v3, %v401_v4  ;;  %v3127_v11 = vcombine.high %v398_v5, %v402_v6  ;;  %v454_v3 = vld [vmem:[%s3652_s23 + $0x748] sm:$0xff]  ;;  %v3174_v6 = vcombine.low %v446_v57, %v450_v58 }
  0x98   : > { %2216 = vmatprep.subr.bf16.mxu0 %v3069_v12  ;;  %2339 = vmatprep.subr.bf16.mxu1 %v3071_v13  ;;  %v405_v12 = vld [vmem:[%s3652_s23 + $0x5c0] sm:$0xff]  ;;  %v458_v4 = vld [vmem:[%s3652_s23 + $0x768] sm:$0xff] }
  0x99   : > { %v409_v13 = vld [vmem:[%s3652_s23 + $0x5e0] sm:$0xff] }
  0x9a   : > { %v3132_v25 = vcombine.low %v405_v12, %v409_v13 }
  0x9b   : > { %2217 = vmatpush1.bf16.msra.mxu0 %v3068_v18  ;;  %2340 = vmatpush1.bf16.msra.mxu1 %v3070_v19  ;;  %v3133_v18 = vcombine.high %v405_v12, %v409_v13  ;;  %v3135_v19 = vcombine.high %v406_v14, %v410_v15  ;;  %v462_v12 = vld [vmem:[%s3652_s23 + $0x788] sm:$0xff]  ;;  %v3182_v15 = vcombine.low %v454_v3, %v458_v4 }
  0x9c   : > { %2227 = vmatprep.subr.bf16.mxu0 %v3077_v20  ;;  %2350 = vmatprep.subr.bf16.mxu1 %v3079_v21  ;;  %v413_v20 = vld [vmem:[%s3652_s23 + $0x600] sm:$0xff]  ;;  %v466_v13 = vld [vmem:[%s3652_s23 + $0x7a8] sm:$0xff] }
  0x9d   : > { %v417_v21 = vld [vmem:[%s3652_s23 + $0x620] sm:$0xff] }
  0x9e   : > { %2219 = vmatmul.mubr.bf16.vlgmr.msra.gmra.mrb[0].mxu0 %v3766_v24  ;;  %2342 = vmatmul.mubr.bf16.vlgmr.msra.gmra.mrb[0].mxu1 %v3766_v24  ;;  %v3140_v0 = vcombine.low %v413_v20, %v417_v21 }
  0x9f   : > { %2228 = vmatpush1.bf16.msra.mxu0 %v3076_v27  ;;  %2351 = vmatpush1.bf16.msra.mxu1 %v3078_v28  ;;  %v3141_v27 = vcombine.high %v413_v20, %v417_v21  ;;  %v3143_v28 = vcombine.high %v414_v22, %v418_v23  ;;  %v470_v20 = vld [vmem:[%s3652_s23 + $0x7c8] sm:$0xff]  ;;  %v3190_v23 = vcombine.low %v462_v12, %v466_v13 }
  0xa0   : > { %2229 = vmatprep.subr.bf16.mxu0 %v3085_v29  ;;  %2352 = vmatprep.subr.bf16.mxu1 %v3087_v30  ;;  %v421_v29 = vld [vmem:[%s3652_s23 + $0x640] sm:$0xff]  ;;  %v474_v21 = vld [vmem:[%s3652_s23 + $0x7e8] sm:$0xff] }
  0xa1   : > { %2259 = vmatprep.mubr.bf16.mxu0 %v3774_v33  ;;  %2382 = vmatprep.mubr.bf16.mxu1 %v3774_v33  ;;  %v425_v30 = vld [vmem:[%s3652_s23 + $0x660] sm:$0xff] }
  0xa2   : > { %v3148_v41 = vcombine.low %v421_v29, %v425_v30 }
  0xa3   : > { %2230 = vmatpush1.bf16.msra.mxu0 %v3084_v35  ;;  %2353 = vmatpush1.bf16.msra.mxu1 %v3086_v36  ;;  %v3149_v35 = vcombine.high %v421_v29, %v425_v30  ;;  %v3151_v36 = vcombine.high %v422_v31, %v426_v32  ;;  %v478_v29 = vld [vmem:[%s3652_s23 + $0x808] sm:$0xff]  ;;  %v3198_v32 = vcombine.low %v470_v20, %v474_v21 }
  0xa4   : > { %2231 = vmatprep.subr.bf16.mxu0 %v3093_v37  ;;  %2354 = vmatprep.subr.bf16.mxu1 %v3095_v38  ;;  %v429_v37 = vld [vmem:[%s3652_s23 + $0x680] sm:$0xff]  ;;  %v482_v30 = vld [vmem:[%s3652_s23 + $0x828] sm:$0xff] }
  0xa5   : > { %v433_v38 = vld [vmem:[%s3652_s23 + $0x6a0] sm:$0xff] }
  0xa6   : > { %v3156_v50 = vcombine.low %v429_v37, %v433_v38 }
  0xa7   : > { %2232 = vmatpush1.bf16.msra.mxu0 %v3092_v43  ;;  %2355 = vmatpush1.bf16.msra.mxu1 %v3094_v44  ;;  %v3157_v43 = vcombine.high %v429_v37, %v433_v38  ;;  %v3159_v44 = vcombine.high %v430_v39, %v434_v40  ;;  %v3842_v37 = vcombine.high %v3766_v24, %v3766_v24  ;;  %v486_v38 = vld [vmem:[%s3652_s23 + $0x848] sm:$0xff] }
  0xa8   : > { %2233 = vmatprep.subr.bf16.mxu0 %v3101_v46  ;;  %2356 = vmatprep.subr.bf16.mxu1 %v3103_v47  ;;  %v437_v46 = vld [vmem:[%s3652_s23 + $0x6c0] sm:$0xff]  ;;  %v490_v39 = vld [vmem:[%s3652_s23 + $0x868] sm:$0xff] }
  0xa9   : > { %v441_v47 = vld [vmem:[%s3652_s23 + $0x6e0] sm:$0xff] }
  0xaa   : > { %v3164_v59 = vcombine.low %v437_v46, %v441_v47 }
  0xab   : > { %2234 = vmatpush1.bf16.msra.mxu0 %v3100_v52  ;;  %2357 = vmatpush1.bf16.msra.mxu1 %v3102_v53  ;;  %v3165_v52 = vcombine.high %v437_v46, %v441_v47  ;;  %v3167_v53 = vcombine.high %v438_v48, %v442_v49  ;;  %v497_v46 = vld [vmem:[%s3652_s23 + $0x8a0] sm:$0xff]  ;;  %v494_v47 = vld [vmem:[%s3652_s23 + $0x888] sm:$0xff] }
  0xac   : > { %2235 = vmatprep.subr.bf16.mxu0 %v3109_v55  ;;  %2358 = vmatprep.subr.bf16.mxu1 %v3111_v56  ;;  %v445_v55 = vld [vmem:[%s3652_s23 + $0x700] sm:$0xff]  ;;  %v498_v48 = vld [vmem:[%s3652_s23 + $0x8a8] sm:$0xff] }
  0xad   : > { %v449_v56 = vld [vmem:[%s3652_s23 + $0x720] sm:$0xff] }
  0xae   : > { %v3172_v5 = vcombine.low %v445_v55, %v449_v56 }
  0xaf   : > { %2236 = vmatpush1.bf16.msra.mxu0 %v3108_v62  ;;  %2359 = vmatpush1.bf16.msra.mxu1 %v3110_v63  ;;  %v3173_v62 = vcombine.high %v445_v55, %v449_v56  ;;  %v3175_v63 = vcombine.high %v446_v57, %v450_v58  ;;  %v505_v55 = vld [vmem:[%s3652_s23 + $0x8e0] sm:$0xff]  ;;  %v3512_v56 = vmov 0   ;;  %v502_v57 = vld [vmem:[%s3652_s23 + $0x8c8] sm:$0xff] }
  0xb0   : > { %2237 = vmatprep.subr.bf16.mxu0 %v3117_v1  ;;  %2360 = vmatprep.subr.bf16.mxu1 %v3119_v2  ;;  %v453_v1 = vld [vmem:[%s3652_s23 + $0x740] sm:$0xff]  ;;  %v506_v58 = vld [vmem:[%s3652_s23 + $0x8e8] sm:$0xff] }
  0xb1   : > { %v457_v2 = vld [vmem:[%s3652_s23 + $0x760] sm:$0xff] }
  0xb2   : > { %v3180_v14 = vcombine.low %v453_v1, %v457_v2 }
  0xb3   : > { %2238 = vmatpush1.bf16.msra.mxu0 %v3116_v7  ;;  %2361 = vmatpush1.bf16.msra.mxu1 %v3118_v8  ;;  %v3181_v7 = vcombine.high %v453_v1, %v457_v2  ;;  %v3183_v8 = vcombine.high %v454_v3, %v458_v4  ;;  %v509_v1 = vld [vmem:[%s3652_s23 + $0x900] sm:$0xff]  ;;  %v510_v3 = vld [vmem:[%s3652_s23 + $0x908] sm:$0xff] }
  0xb4   : > { %2239 = vmatprep.subr.bf16.mxu0 %v3125_v9  ;;  %2362 = vmatprep.subr.bf16.mxu1 %v3127_v11  ;;  %v461_v9 = vld [vmem:[%s3652_s23 + $0x780] sm:$0xff]  ;;  %v514_v4 = vld [vmem:[%s3652_s23 + $0x928] sm:$0xff] }
  0xb5   : > { %v465_v11 = vld [vmem:[%s3652_s23 + $0x7a0] sm:$0xff] }
  0xb6   : > { %v3188_v22 = vcombine.low %v461_v9, %v465_v11  ;;  %v513_v2 = vld [vmem:[%s3652_s23 + $0x920] sm:$0xff] }
  0xb7   : > { %2240 = vmatpush1.bf16.msra.mxu0 %v3124_v16  ;;  %2363 = vmatpush1.bf16.msra.mxu1 %v3126_v17  ;;  %v3189_v16 = vcombine.high %v461_v9, %v465_v11  ;;  %v3191_v17 = vcombine.high %v462_v12, %v466_v13  ;;  %v517_v9 = vld [vmem:[%s3652_s23 + $0x940] sm:$0xff]  ;;  %v518_v12 = vld [vmem:[%s3652_s23 + $0x948] sm:$0xff] }
  0xb8   : > { %2241 = vmatprep.subr.bf16.mxu0 %v3133_v18  ;;  %2364 = vmatprep.subr.bf16.mxu1 %v3135_v19  ;;  %v469_v18 = vld [vmem:[%s3652_s23 + $0x7c0] sm:$0xff]  ;;  %v522_v13 = vld [vmem:[%s3652_s23 + $0x968] sm:$0xff] }
  0xb9   : > { %v473_v19 = vld [vmem:[%s3652_s23 + $0x7e0] sm:$0xff] }
  0xba   : > { %v3196_v31 = vcombine.low %v469_v18, %v473_v19  ;;  %v521_v11 = vld [vmem:[%s3652_s23 + $0x960] sm:$0xff] }
  0xbb   : > { %2242 = vmatpush1.bf16.msra.mxu0 %v3132_v25  ;;  %2365 = vmatpush1.bf16.msra.mxu1 %v3134_v26  ;;  %v3197_v25 = vcombine.high %v469_v18, %v473_v19  ;;  %v3199_v26 = vcombine.high %v470_v20, %v474_v21  ;;  %v525_v18 = vld [vmem:[%s3652_s23 + $0x980] sm:$0xff]  ;;  %v526_v20 = vld [vmem:[%s3652_s23 + $0x988] sm:$0xff] }
  0xbc   : > { %2243 = vmatprep.subr.bf16.mxu0 %v3141_v27  ;;  %2366 = vmatprep.subr.bf16.mxu1 %v3143_v28  ;;  %v477_v27 = vld [vmem:[%s3652_s23 + $0x800] sm:$0xff]  ;;  %v530_v21 = vld [vmem:[%s3652_s23 + $0x9a8] sm:$0xff] }
  0xbd   : > { %v481_v28 = vld [vmem:[%s3652_s23 + $0x820] sm:$0xff] }
  0xbe   : > { %v3204_v40 = vcombine.low %v477_v27, %v481_v28  ;;  %v529_v19 = vld [vmem:[%s3652_s23 + $0x9a0] sm:$0xff] }
  0xbf   : > { %2244 = vmatpush1.bf16.msra.mxu0 %v3140_v0  ;;  %2367 = vmatpush1.bf16.msra.mxu1 %v3142_v34  ;;  %v3205_v0 = vcombine.high %v477_v27, %v481_v28  ;;  %v3207_v34 = vcombine.high %v478_v29, %v482_v30  ;;  %v533_v27 = vld [vmem:[%s3652_s23 + $0x9c0] sm:$0xff] }
  0xc0   : > { %2245 = vmatprep.subr.bf16.mxu0 %v3149_v35  ;;  %2368 = vmatprep.subr.bf16.mxu1 %v3151_v36  ;;  %v485_v35 = vld [vmem:[%s3652_s23 + $0x840] sm:$0xff] }
  0xc1   : > { %v489_v36 = vld [vmem:[%s3652_s23 + $0x860] sm:$0xff] }
  0xc2   : > { %v3212_v49 = vcombine.low %v485_v35, %v489_v36  ;;  %v537_v28 = vld [vmem:[%s3652_s23 + $0x9e0] sm:$0xff] }
  0xc3   : > { %2246 = vmatpush1.bf16.msra.mxu0 %v3148_v41  ;;  %2369 = vmatpush1.bf16.msra.mxu1 %v3150_v42  ;;  %v3206_v41 = vcombine.low %v478_v29, %v482_v30  ;;  %v3213_v42 = vcombine.high %v485_v35, %v489_v36  ;;  %v534_v29 = vld [vmem:[%s3652_s23 + $0x9c8] sm:$0xff]  ;;  %v223_v36 = vld [vmem:[%s3652_s23 + $0x10] sm:$0xff] }
  0xc4   : > { %2247 = vmatprep.subr.bf16.mxu0 %v3157_v43  ;;  %2370 = vmatprep.subr.bf16.mxu1 %v3159_v44  ;;  %v3215_v43 = vcombine.high %v486_v38, %v490_v39  ;;  %v493_v44 = vld [vmem:[%s3652_s23 + $0x880] sm:$0xff]  ;;  %v538_v30 = vld [vmem:[%s3652_s23 + $0x9e8] sm:$0xff] }
  0xc5   : > { %v3263_v35 = vcombine.high %v534_v29, %v538_v30 }
  0xc7   : > { %2248 = vmatpush1.bf16.msra.mxu0 %v3156_v50  ;;  %2371 = vmatpush1.bf16.msra.mxu1 %v3158_v51  ;;  %v3214_v50 = vcombine.low %v486_v38, %v490_v39  ;;  %v3221_v51 = vcombine.high %v493_v44, %v497_v46  ;;  %v227_v38 = vld [vmem:[%s3652_s23 + $0x30] sm:$0xff] }
  0xc8   : > { %2249 = vmatprep.subr.bf16.mxu0 %v3165_v52  ;;  %2372 = vmatprep.subr.bf16.mxu1 %v3167_v53  ;;  %v3223_v52 = vcombine.high %v494_v47, %v498_v48  ;;  %v501_v53 = vld [vmem:[%s3652_s23 + $0x8c0] sm:$0xff] }
  0xcb   : > { %2250 = vmatpush1.bf16.msra.mxu0 %v3164_v59  ;;  %2373 = vmatpush1.bf16.msra.mxu1 %v3166_v61  ;;  %v3220_v59 = vcombine.low %v493_v44, %v497_v46  ;;  %v3222_v61 = vcombine.low %v494_v47, %v498_v48  ;;  %v231_v46 = vld [vmem:[%s3652_s23 + $0x50] sm:$0xff] }
  0xcc   : > { %2251 = vmatprep.subr.bf16.mxu0 %v3173_v62  ;;  %2374 = vmatprep.subr.bf16.mxu1 %v3175_v63  ;;  %v3229_v62 = vcombine.high %v501_v53, %v505_v55  ;;  %v3231_v63 = vcombine.high %v502_v57, %v506_v58  ;;  %v235_v47 = vld [vmem:[%s3652_s23 + $0x70] sm:$0xff] }
  0xcf   : > { %2252 = vmatpush1.bf16.msra.mxu0 %v3172_v5  ;;  %2375 = vmatpush1.bf16.msra.mxu1 %v3174_v6  ;;  %v3228_v5 = vcombine.low %v501_v53, %v505_v55  ;;  %v3230_v6 = vcombine.low %v502_v57, %v506_v58  ;;  %v2961_v53 = vcombine.high %v231_v46, %v235_v47  ;;  %v239_v57 = vld [vmem:[%s3652_s23 + $0x90] sm:$0xff] }
  0xd0   : > { %2253 = vmatprep.subr.bf16.mxu0 %v3181_v7  ;;  %2376 = vmatprep.subr.bf16.mxu1 %v3183_v8  ;;  %v3237_v7 = vcombine.high %v509_v1, %v513_v2  ;;  %v3239_v8 = vcombine.high %v510_v3, %v514_v4  ;;  %v243_v58 = vld [vmem:[%s3652_s23 + $0xb0] sm:$0xff] }
  0xd3   : > { %2254 = vmatpush1.bf16.msra.mxu0 %v3180_v14  ;;  %2377 = vmatpush1.bf16.msra.mxu1 %v3182_v15  ;;  %v3236_v14 = vcombine.low %v509_v1, %v513_v2  ;;  %v3238_v15 = vcombine.low %v510_v3, %v514_v4  ;;  %v2969_v1 = vcombine.high %v239_v57, %v243_v58  ;;  %v247_v3 = vld [vmem:[%s3652_s23 + $0xd0] sm:$0xff] }
  0xd4   : > { %2255 = vmatprep.subr.bf16.mxu0 %v3189_v16  ;;  %2378 = vmatprep.subr.bf16.mxu1 %v3191_v17  ;;  %v3245_v16 = vcombine.high %v517_v9, %v521_v11  ;;  %v3247_v17 = vcombine.high %v518_v12, %v522_v13  ;;  %v251_v4 = vld [vmem:[%s3652_s23 + $0xf0] sm:$0xff] }
  0xd7   : > { %2256 = vmatpush1.bf16.msra.mxu0 %v3188_v22  ;;  %2379 = vmatpush1.bf16.msra.mxu1 %v3190_v23  ;;  %v3244_v22 = vcombine.low %v517_v9, %v521_v11  ;;  %v3246_v23 = vcombine.low %v518_v12, %v522_v13  ;;  %v2977_v9 = vcombine.high %v247_v3, %v251_v4  ;;  %v255_v12 = vld [vmem:[%s3652_s23 + $0x110] sm:$0xff] }
  0xd8   : > { %2257 = vmatprep.subr.bf16.mxu0 %v3197_v25  ;;  %2380 = vmatprep.subr.bf16.mxu1 %v3199_v26  ;;  %v3253_v25 = vcombine.high %v525_v18, %v529_v19  ;;  %v3255_v26 = vcombine.high %v526_v20, %v530_v21  ;;  %v259_v13 = vld [vmem:[%s3652_s23 + $0x130] sm:$0xff] }
  0xdb   : > { %2258 = vmatpush1.bf16.msra.mxu0 %v3196_v31  ;;  %2381 = vmatpush1.bf16.msra.mxu1 %v3198_v32  ;;  %v542_v31 = vcombine.high %v3709_v60, %v3709_v60  ;;  %v3252_v32 = vcombine.low %v525_v18, %v529_v19  ;;  %v3260_v60 = vcombine.low %v533_v27, %v537_v28  ;;  %v263_v19 = vld [vmem:[%s3652_s23 + $0x150] sm:$0xff] }
  0xdc   : > { %2268 = vmatprep.subr.bf16.mxu0 %v3205_v0  ;;  %2391 = vmatprep.subr.bf16.mxu1 %v3207_v34  ;;  %v3254_v0 = vcombine.low %v526_v20, %v530_v21  ;;  %v3261_v34 = vcombine.high %v533_v27, %v537_v28  ;;  %v267_v20 = vld [vmem:[%s3652_s23 + $0x170] sm:$0xff]  ;;  %v264_v21 = vld [vmem:[%s3652_s23 + $0x158] sm:$0xff] }
  0xdd   : > { %v556_v39 = vrot.slane %v542_v31, %v3700_v54  ;;  %v271_v28 = vld [vmem:[%s3652_s23 + $0x190] sm:$0xff]  ;;  %v276_v31 = vld [vmem:[%s3652_s23 + $0x1b8] sm:$0xff] }
  0xde   : > { %2260 = vmatmul.mubr.bf16.vlgmr.msra.gmra.mrb[0].mxu0 %v3842_v37  ;;  %2383 = vmatmul.mubr.bf16.vlgmr.msra.gmra.mrb[0].mxu1 %v3842_v37 }
  0xdf   : > { %2269 = vmatpush1.bf16.msra.mxu0 %v3204_v40  ;;  %2392 = vmatpush1.bf16.msra.mxu1 %v3206_v41  ;;  %v224_v40 = vld [vmem:[%s3652_s23 + $0x18] sm:$0xff]  ;;  %v3884_v48 = vrot.slane %v556_v39, %v3700_v54 }
  0xe0   : > { %2270 = vmatprep.subr.bf16.mxu0 %v3213_v42  ;;  %2393 = vmatprep.subr.bf16.mxu1 %v3215_v43  ;;  %v228_v41 = vld [vmem:[%s3652_s23 + $0x38] sm:$0xff]  ;;  %v3262_v42 = vcombine.low %v534_v29, %v538_v30  ;;  %v2953_v43 = vcombine.high %v223_v36, %v227_v38  ;;  %v275_v29 = vld [vmem:[%s3652_s23 + $0x1b0] sm:$0xff] }
  0xe1   : > { %2300 = vmatprep.mubr.bf16.mxu0 %v3512_v56  ;;  %2423 = vmatprep.mubr.bf16.mxu1 %v3512_v56  ;;  %v2955_v44 = vcombine.high %v224_v40, %v228_v41  ;;  %v272_v30 = vld [vmem:[%s3652_s23 + $0x198] sm:$0xff] }
  0xe2   : > { %v280_v39 = vld [vmem:[%s3652_s23 + $0x1d8] sm:$0xff] }
  0xe3   : > { %2271 = vmatpush1.bf16.msra.mxu0 %v3212_v49  ;;  %2394 = vmatpush1.bf16.msra.mxu1 %v3214_v50  ;;  %v232_v49 = vld [vmem:[%s3652_s23 + $0x58] sm:$0xff] }
  0xe4   : > { %2272 = vmatprep.subr.bf16.mxu0 %v3221_v51  ;;  %2395 = vmatprep.subr.bf16.mxu1 %v3223_v52  ;;  %v236_v50 = vld [vmem:[%s3652_s23 + $0x78] sm:$0xff]  ;;  %v2952_v51 = vcombine.low %v223_v36, %v227_v38  ;;  %v2954_v52 = vcombine.low %v224_v40, %v228_v41  ;;  %v279_v36 = vld [vmem:[%s3652_s23 + $0x1d0] sm:$0xff]  ;;  %v3000_v41 = vcombine.low %v271_v28, %v275_v29 }
  0xe5   : > { %v2963_v55 = vcombine.high %v232_v49, %v236_v50  ;;  %v283_v38 = vld [vmem:[%s3652_s23 + $0x1f0] sm:$0xff]  ;;  %v284_v40 = vld [vmem:[%s3652_s23 + $0x1f8] sm:$0xff] }
  0xe7   : > { %2273 = vmatpush1.bf16.msra.mxu0 %v3220_v59  ;;  %2396 = vmatpush1.bf16.msra.mxu1 %v3222_v61  ;;  %v240_v59 = vld [vmem:[%s3652_s23 + $0x98] sm:$0xff] }
  0xe8   : > { %2274 = vmatprep.subr.bf16.mxu0 %v3229_v62  ;;  %2397 = vmatprep.subr.bf16.mxu1 %v3231_v63  ;;  %v244_v61 = vld [vmem:[%s3652_s23 + $0xb8] sm:$0xff]  ;;  %v2960_v62 = vcombine.low %v231_v46, %v235_v47  ;;  %v2962_v63 = vcombine.low %v232_v49, %v236_v50  ;;  %v291_v46 = vld [vmem:[%s3652_s23 + $0x230] sm:$0xff]  ;;  %v3008_v50 = vcombine.low %v279_v36, %v283_v38 }
  0xe9   : > { %v2971_v2 = vcombine.high %v240_v59, %v244_v61  ;;  %v288_v47 = vld [vmem:[%s3652_s23 + $0x218] sm:$0xff] }
  0xea   : > { %v292_v49 = vld [vmem:[%s3652_s23 + $0x238] sm:$0xff] }
  0xeb   : > { %2275 = vmatpush1.bf16.msra.mxu0 %v3228_v5  ;;  %2398 = vmatpush1.bf16.msra.mxu1 %v3230_v6  ;;  %v248_v5 = vld [vmem:[%s3652_s23 + $0xd8] sm:$0xff] }
  0xec   : > { %2276 = vmatprep.subr.bf16.mxu0 %v3237_v7  ;;  %2399 = vmatprep.subr.bf16.mxu1 %v3239_v8  ;;  %v252_v6 = vld [vmem:[%s3652_s23 + $0xf8] sm:$0xff]  ;;  %v2968_v7 = vcombine.low %v239_v57, %v243_v58  ;;  %v2970_v8 = vcombine.low %v240_v59, %v244_v61  ;;  %v299_v57 = vld [vmem:[%s3652_s23 + $0x270] sm:$0xff] }
  0xed   : > { %v2979_v11 = vcombine.high %v248_v5, %v252_v6  ;;  %v296_v58 = vld [vmem:[%s3652_s23 + $0x258] sm:$0xff] }
  0xee   : > { %v300_v59 = vld [vmem:[%s3652_s23 + $0x278] sm:$0xff] }
  0xef   : > { %2277 = vmatpush1.bf16.msra.mxu0 %v3236_v14  ;;  %2400 = vmatpush1.bf16.msra.mxu1 %v3238_v15  ;;  %v256_v14 = vld [vmem:[%s3652_s23 + $0x118] sm:$0xff] }
  0xf0   : > { %2278 = vmatprep.subr.bf16.mxu0 %v3245_v16  ;;  %2401 = vmatprep.subr.bf16.mxu1 %v3247_v17  ;;  %v260_v15 = vld [vmem:[%s3652_s23 + $0x138] sm:$0xff]  ;;  %v2976_v16 = vcombine.low %v247_v3, %v251_v4  ;;  %v2985_v17 = vcombine.high %v255_v12, %v259_v13  ;;  %v307_v3 = vld [vmem:[%s3652_s23 + $0x2b0] sm:$0xff] }
  0xf1   : > { %v2987_v18 = vcombine.high %v256_v14, %v260_v15  ;;  %v304_v4 = vld [vmem:[%s3652_s23 + $0x298] sm:$0xff] }
  0xf3   : > { %2279 = vmatpush1.bf16.msra.mxu0 %v3244_v22  ;;  %2402 = vmatpush1.bf16.msra.mxu1 %v3246_v23  ;;  %v268_v22 = vld [vmem:[%s3652_s23 + $0x178] sm:$0xff]  ;;  %v2984_v23 = vcombine.low %v255_v12, %v259_v13  ;;  %v315_v12 = vld [vmem:[%s3652_s23 + $0x2f0] sm:$0xff] }
  0xf4   : > { %2280 = vmatprep.subr.bf16.mxu0 %v3253_v25  ;;  %2403 = vmatprep.subr.bf16.mxu1 %v3255_v26  ;;  %v2986_v25 = vcombine.low %v256_v14, %v260_v15  ;;  %v2993_v26 = vcombine.high %v263_v19, %v267_v20  ;;  %v2995_v27 = vcombine.high %v264_v21, %v268_v22  ;;  %v312_v13 = vld [vmem:[%s3652_s23 + $0x2d8] sm:$0xff] }
  0xf5   : > { %v316_v14 = vld [vmem:[%s3652_s23 + $0x2f8] sm:$0xff] }
  0xf7   : > { %2281 = vmatpush1.bf16.msra.mxu0 %v3252_v32  ;;  %2404 = vmatpush1.bf16.msra.mxu1 %v3254_v0  ;;  %v2992_v32 = vcombine.low %v263_v19, %v267_v20  ;;  %v2994_v0 = vcombine.low %v264_v21, %v268_v22  ;;  %v323_v19 = vld [vmem:[%s3652_s23 + $0x330] sm:$0xff]  ;;  %v320_v20 = vld [vmem:[%s3652_s23 + $0x318] sm:$0xff] }
  0xf8   : > { %2282 = vmatprep.subr.bf16.mxu0 %v3261_v34  ;;  %2405 = vmatprep.subr.bf16.mxu1 %v3263_v35  ;;  %v3001_v34 = vcombine.high %v271_v28, %v275_v29  ;;  %v3003_v35 = vcombine.high %v272_v30, %v276_v31  ;;  %v324_v21 = vld [vmem:[%s3652_s23 + $0x338] sm:$0xff]  ;;  %v331_v28 = vld [vmem:[%s3652_s23 + $0x370] sm:$0xff] }
  0xf9   : > { %v328_v29 = vld [vmem:[%s3652_s23 + $0x358] sm:$0xff] }
  0xfb   : > { %2283 = vmatpush1.bf16.msra.mxu0 %v3260_v60  ;;  %2406 = vmatpush1.bf16.msra.mxu1 %v3262_v42  ;;  %v3002_v60 = vcombine.low %v272_v30, %v276_v31  ;;  %v3009_v42 = vcombine.high %v279_v36, %v283_v38  ;;  %v332_v30 = vld [vmem:[%s3652_s23 + $0x378] sm:$0xff]  ;;  %v339_v36 = vld [vmem:[%s3652_s23 + $0x3b0] sm:$0xff] }
  0xfc   : > { %2432 = vmatprep.subr.bf16.mxu0 %v2953_v43  ;;  %2555 = vmatprep.subr.bf16.mxu1 %v2955_v44  ;;  %v3011_v43 = vcombine.high %v280_v39, %v284_v40  ;;  %v287_v44 = vld [vmem:[%s3652_s23 + $0x210] sm:$0xff]  ;;  %v336_v38 = vld [vmem:[%s3652_s23 + $0x398] sm:$0xff] }
  0xfd   : > { %v3016_v61 = vcombine.low %v287_v44, %v291_v46 }
  0xfe   : > { %2301 = vmatmul.mubr.bf16.vlgmr.msra.gmra.mrb[0].mxu0 %v3884_v48  ;;  %2424 = vmatmul.mubr.bf16.vlgmr.msra.gmra.mrb[0].mxu1 %v3884_v48 }
  0xff   : > { %2433 = vmatpush1.bf16.msra.mxu0 %v2952_v51  ;;  %2556 = vmatpush1.bf16.msra.mxu1 %v2954_v52  ;;  %v3010_v51 = vcombine.low %v280_v39, %v284_v40  ;;  %v3017_v52 = vcombine.high %v287_v44, %v291_v46  ;;  %v340_v39 = vld [vmem:[%s3652_s23 + $0x3b8] sm:$0xff]  ;;  %v347_v44 = vld [vmem:[%s3652_s23 + $0x3f0] sm:$0xff] }
 0x100   : > { %2434 = vmatprep.subr.bf16.mxu0 %v2961_v53  ;;  %2557 = vmatprep.subr.bf16.mxu1 %v2963_v55  ;;  %v3019_v53 = vcombine.high %v288_v47, %v292_v49  ;;  %v295_v55 = vld [vmem:[%s3652_s23 + $0x250] sm:$0xff]  ;;  %v344_v46 = vld [vmem:[%s3652_s23 + $0x3d8] sm:$0xff] }
 0x101   : > { %2464 = vmatprep.mubr.bf16.mxu0 %v3724_v10  ;;  %2587 = vmatprep.mubr.bf16.mxu1 %v3724_v10  ;;  %v2978_v10 = vcombine.low %v248_v5, %v252_v6  ;;  %v308_v5 = vld [vmem:[%s3652_s23 + $0x2b8] sm:$0xff]  ;;  %v3024_v6 = vcombine.low %v295_v55, %v299_v57 }
 0x103   : > { %2435 = vmatpush1.bf16.msra.mxu0 %v2960_v62  ;;  %2558 = vmatpush1.bf16.msra.mxu1 %v2962_v63  ;;  %v3018_v62 = vcombine.low %v288_v47, %v292_v49  ;;  %v3025_v63 = vcombine.high %v295_v55, %v299_v57  ;;  %v348_v47 = vld [vmem:[%s3652_s23 + $0x3f8] sm:$0xff]  ;;  %v355_v55 = vld [vmem:[%s3652_s23 + $0x430] sm:$0xff] }
 0x104   : > { %2436 = vmatprep.subr.bf16.mxu0 %v2969_v1  ;;  %2559 = vmatprep.subr.bf16.mxu1 %v2971_v2  ;;  %v3027_v1 = vcombine.high %v296_v58, %v300_v59  ;;  %v303_v2 = vld [vmem:[%s3652_s23 + $0x290] sm:$0xff]  ;;  %v352_v57 = vld [vmem:[%s3652_s23 + $0x418] sm:$0xff] }
 0x105   : > { %v3032_v15 = vcombine.low %v303_v2, %v307_v3 }
 0x107   : > { %2437 = vmatpush1.bf16.msra.mxu0 %v2968_v7  ;;  %2560 = vmatpush1.bf16.msra.mxu1 %v2970_v8  ;;  %v3026_v7 = vcombine.low %v296_v58, %v300_v59  ;;  %v3033_v8 = vcombine.high %v303_v2, %v307_v3  ;;  %v356_v58 = vld [vmem:[%s3652_s23 + $0x438] sm:$0xff]  ;;  %v363_v2 = vld [vmem:[%s3652_s23 + $0x470] sm:$0xff] }
 0x108   : > { %2438 = vmatprep.subr.bf16.mxu0 %v2977_v9  ;;  %2561 = vmatprep.subr.bf16.mxu1 %v2979_v11  ;;  %v3035_v9 = vcombine.high %v304_v4, %v308_v5  ;;  %v311_v11 = vld [vmem:[%s3652_s23 + $0x2d0] sm:$0xff]  ;;  %v360_v3 = vld [vmem:[%s3652_s23 + $0x458] sm:$0xff] }
 0x109   : > { %v3040_v22 = vcombine.low %v311_v11, %v315_v12 }
 0x10b   : > { %2439 = vmatpush1.bf16.msra.mxu0 %v2976_v16  ;;  %2562 = vmatpush1.bf16.msra.mxu1 %v2978_v10  ;;  %v3034_v16 = vcombine.low %v304_v4, %v308_v5  ;;  %v3041_v10 = vcombine.high %v311_v11, %v315_v12  ;;  %v364_v4 = vld [vmem:[%s3652_s23 + $0x478] sm:$0xff]  ;;  %v371_v11 = vld [vmem:[%s3652_s23 + $0x4b0] sm:$0xff] }
 0x10c   : > { %2440 = vmatprep.subr.bf16.mxu0 %v2985_v17  ;;  %2563 = vmatprep.subr.bf16.mxu1 %v2987_v18  ;;  %v3043_v17 = vcombine.high %v312_v13, %v316_v14  ;;  %v319_v18 = vld [vmem:[%s3652_s23 + $0x310] sm:$0xff]  ;;  %v368_v12 = vld [vmem:[%s3652_s23 + $0x498] sm:$0xff] }
 0x10d   : > { %v3048_v31 = vcombine.low %v319_v18, %v323_v19 }
 0x10f   : > { %2441 = vmatpush1.bf16.msra.mxu0 %v2984_v23  ;;  %2564 = vmatpush1.bf16.msra.mxu1 %v2986_v25  ;;  %v3042_v23 = vcombine.low %v312_v13, %v316_v14  ;;  %v3049_v25 = vcombine.high %v319_v18, %v323_v19  ;;  %v372_v13 = vld [vmem:[%s3652_s23 + $0x4b8] sm:$0xff]  ;;  %v379_v18 = vld [vmem:[%s3652_s23 + $0x4f0] sm:$0xff] }
 0x110   : > { %2442 = vmatprep.subr.bf16.mxu0 %v2993_v26  ;;  %2565 = vmatprep.subr.bf16.mxu1 %v2995_v27  ;;  %v3051_v26 = vcombine.high %v320_v20, %v324_v21  ;;  %v327_v27 = vld [vmem:[%s3652_s23 + $0x350] sm:$0xff]  ;;  %v376_v19 = vld [vmem:[%s3652_s23 + $0x4d8] sm:$0xff] }
 0x111   : > { %v3056_v40 = vcombine.low %v327_v27, %v331_v28 }
 0x113   : > { %2443 = vmatpush1.bf16.msra.mxu0 %v2992_v32  ;;  %2566 = vmatpush1.bf16.msra.mxu1 %v2994_v0  ;;  %v3050_v32 = vcombine.low %v320_v20, %v324_v21  ;;  %v3057_v0 = vcombine.high %v327_v27, %v331_v28  ;;  %v380_v20 = vld [vmem:[%s3652_s23 + $0x4f8] sm:$0xff]  ;;  %v3098_v21 = vcombine.low %v368_v12, %v372_v13 }
 0x114   : > { %2444 = vmatprep.subr.bf16.mxu0 %v3001_v34  ;;  %2567 = vmatprep.subr.bf16.mxu1 %v3003_v35  ;;  %v3059_v34 = vcombine.high %v328_v29, %v332_v30  ;;  %v335_v35 = vld [vmem:[%s3652_s23 + $0x390] sm:$0xff]  ;;  %v384_v27 = vld [vmem:[%s3652_s23 + $0x518] sm:$0xff] }
 0x115   : > { %v3064_v49 = vcombine.low %v335_v35, %v339_v36  ;;  %v388_v28 = vld [vmem:[%s3652_s23 + $0x538] sm:$0xff] }
 0x117   : > { %2445 = vmatpush1.bf16.msra.mxu0 %v3000_v41  ;;  %2568 = vmatpush1.bf16.msra.mxu1 %v3002_v60  ;;  %v3058_v41 = vcombine.low %v328_v29, %v332_v30  ;;  %v3065_v60 = vcombine.high %v335_v35, %v339_v36  ;;  %v396_v35 = vld [vmem:[%s3652_s23 + $0x578] sm:$0xff] }
 0x118   : > { %2446 = vmatprep.subr.bf16.mxu0 %v3009_v42  ;;  %2569 = vmatprep.subr.bf16.mxu1 %v3011_v43  ;;  %v3067_v42 = vcombine.high %v336_v38, %v340_v39  ;;  %v343_v43 = vld [vmem:[%s3652_s23 + $0x3d0] sm:$0xff] }
 0x119   : > { %v3072_v59 = vcombine.low %v343_v43, %v347_v44 }
 0x11b   : > { %2447 = vmatpush1.bf16.msra.mxu0 %v3008_v50  ;;  %2570 = vmatpush1.bf16.msra.mxu1 %v3010_v51  ;;  %v3066_v50 = vcombine.low %v336_v38, %v340_v39  ;;  %v3073_v51 = vcombine.high %v343_v43, %v347_v44  ;;  %v3114_v38 = vcombine.low %v384_v27, %v388_v28  ;;  %v404_v43 = vld [vmem:[%s3652_s23 + $0x5b8] sm:$0xff] }
 0x11c   : > { %2448 = vmatprep.subr.bf16.mxu0 %v3017_v52  ;;  %2571 = vmatprep.subr.bf16.mxu1 %v3019_v53  ;;  %v3075_v52 = vcombine.high %v344_v46, %v348_v47  ;;  %v351_v53 = vld [vmem:[%s3652_s23 + $0x410] sm:$0xff] }
 0x11d   : > { %v3080_v5 = vcombine.low %v351_v53, %v355_v55 }
 0x11f   : > { %2449 = vmatpush1.bf16.msra.mxu0 %v3016_v61  ;;  %2572 = vmatpush1.bf16.msra.mxu1 %v3018_v62  ;;  %v3074_v61 = vcombine.low %v344_v46, %v348_v47  ;;  %v3081_v62 = vcombine.high %v351_v53, %v355_v55  ;;  %v412_v53 = vld [vmem:[%s3652_s23 + $0x5f8] sm:$0xff] }
 0x120   : > { %2450 = vmatprep.subr.bf16.mxu0 %v3025_v63  ;;  %2573 = vmatprep.subr.bf16.mxu1 %v3027_v1  ;;  %v3083_v63 = vcombine.high %v352_v57, %v356_v58  ;;  %v359_v1 = vld [vmem:[%s3652_s23 + $0x450] sm:$0xff] }
 0x121   : > { %v3088_v14 = vcombine.low %v359_v1, %v363_v2 }
 0x123   : > { %2451 = vmatpush1.bf16.msra.mxu0 %v3024_v6  ;;  %2574 = vmatpush1.bf16.msra.mxu1 %v3026_v7  ;;  %v3082_v6 = vcombine.low %v352_v57, %v356_v58  ;;  %v3089_v7 = vcombine.high %v359_v1, %v363_v2  ;;  %v420_v1 = vld [vmem:[%s3652_s23 + $0x638] sm:$0xff] }
 0x124   : > { %2452 = vmatprep.subr.bf16.mxu0 %v3033_v8  ;;  %2575 = vmatprep.subr.bf16.mxu1 %v3035_v9  ;;  %v3091_v8 = vcombine.high %v360_v3, %v364_v4  ;;  %v367_v9 = vld [vmem:[%s3652_s23 + $0x490] sm:$0xff] }
 0x127   : > { %2453 = vmatpush1.bf16.msra.mxu0 %v3032_v15  ;;  %2576 = vmatpush1.bf16.msra.mxu1 %v3034_v16  ;;  %v3090_v15 = vcombine.low %v360_v3, %v364_v4  ;;  %v3097_v16 = vcombine.high %v367_v9, %v371_v11 }
 0x128   : > { %2454 = vmatprep.subr.bf16.mxu0 %v3041_v10  ;;  %2577 = vmatprep.subr.bf16.mxu1 %v3043_v17  ;;  %v3099_v10 = vcombine.high %v368_v12, %v372_v13  ;;  %v375_v17 = vld [vmem:[%s3652_s23 + $0x4d0] sm:$0xff] }
 0x129   : > { %v3104_v29 = vcombine.low %v375_v17, %v379_v18 }
 0x12b   : > { %2455 = vmatpush1.bf16.msra.mxu0 %v3040_v22  ;;  %2578 = vmatpush1.bf16.msra.mxu1 %v3042_v23  ;;  %v3105_v22 = vcombine.high %v375_v17, %v379_v18  ;;  %v3107_v23 = vcombine.high %v376_v19, %v380_v20  ;;  %v436_v17 = vld [vmem:[%s3652_s23 + $0x6b8] sm:$0xff] }
 0x12c   : > { %2456 = vmatprep.subr.bf16.mxu0 %v3049_v25  ;;  %2579 = vmatprep.subr.bf16.mxu1 %v3051_v26  ;;  %v383_v25 = vld [vmem:[%s3652_s23 + $0x510] sm:$0xff] }
 0x12d   : > { %v387_v26 = vld [vmem:[%s3652_s23 + $0x530] sm:$0xff] }
 0x12e   : > { %v3113_v30 = vcombine.high %v383_v25, %v387_v26  ;;  %v3112_v36 = vcombine.low %v383_v25, %v387_v26  ;;  %v444_v25 = vld [vmem:[%s3652_s23 + $0x6f8] sm:$0xff] }
 0x12f   : > { %2457 = vmatpush1.bf16.msra.mxu0 %v3048_v31  ;;  %2580 = vmatpush1.bf16.msra.mxu1 %v3050_v32  ;;  %v3115_v31 = vcombine.high %v384_v27, %v388_v28  ;;  %v391_v32 = vld [vmem:[%s3652_s23 + $0x550] sm:$0xff] }
 0x130   : > { %2458 = vmatprep.subr.bf16.mxu0 %v3057_v0  ;;  %2581 = vmatprep.subr.bf16.mxu1 %v3059_v34  ;;  %v395_v0 = vld [vmem:[%s3652_s23 + $0x570] sm:$0xff]  ;;  %v392_v34 = vld [vmem:[%s3652_s23 + $0x558] sm:$0xff] }
 0x131   : > { %v3121_v39 = vcombine.high %v391_v32, %v395_v0  ;;  %v3120_v44 = vcombine.low %v391_v32, %v395_v0  ;;  %v3122_v46 = vcombine.low %v392_v34, %v396_v35  ;;  %v452_v32 = vld [vmem:[%s3652_s23 + $0x738] sm:$0xff] }
 0x133   : > { %2459 = vmatpush1.bf16.msra.mxu0 %v3056_v40  ;;  %2582 = vmatpush1.bf16.msra.mxu1 %v3058_v41  ;;  %v3123_v40 = vcombine.high %v392_v34, %v396_v35  ;;  %v399_v41 = vld [vmem:[%s3652_s23 + $0x590] sm:$0xff] }
 0x134   : > { %2460 = vmatprep.subr.bf16.mxu0 %v3065_v60  ;;  %2583 = vmatprep.subr.bf16.mxu1 %v3067_v42  ;;  %v403_v60 = vld [vmem:[%s3652_s23 + $0x5b0] sm:$0xff]  ;;  %v400_v42 = vld [vmem:[%s3652_s23 + $0x598] sm:$0xff] }
 0x135   : > { %v3129_v47 = vcombine.high %v399_v41, %v403_v60  ;;  %v3128_v55 = vcombine.low %v399_v41, %v403_v60  ;;  %v3130_v57 = vcombine.low %v400_v42, %v404_v43  ;;  %v460_v41 = vld [vmem:[%s3652_s23 + $0x778] sm:$0xff] }
 0x137   : > { %2461 = vmatpush1.bf16.msra.mxu0 %v3064_v49  ;;  %2584 = vmatpush1.bf16.msra.mxu1 %v3066_v50  ;;  %v3131_v49 = vcombine.high %v400_v42, %v404_v43  ;;  %v407_v50 = vld [vmem:[%s3652_s23 + $0x5d0] sm:$0xff] }
 0x138   : > { %2462 = vmatprep.subr.bf16.mxu0 %v3073_v51  ;;  %2585 = vmatprep.subr.bf16.mxu1 %v3075_v52  ;;  %v411_v51 = vld [vmem:[%s3652_s23 + $0x5f0] sm:$0xff]  ;;  %v408_v52 = vld [vmem:[%s3652_s23 + $0x5d8] sm:$0xff] }
 0x139   : > { %v3137_v58 = vcombine.high %v407_v50, %v411_v51  ;;  %v3136_v2 = vcombine.low %v407_v50, %v411_v51  ;;  %v3138_v3 = vcombine.low %v408_v52, %v412_v53  ;;  %v468_v50 = vld [vmem:[%s3652_s23 + $0x7b8] sm:$0xff] }
 0x13b   : > { %2463 = vmatpush1.bf16.msra.mxu0 %v3072_v59  ;;  %2586 = vmatpush1.bf16.msra.mxu1 %v3074_v61  ;;  %v3139_v59 = vcombine.high %v408_v52, %v412_v53  ;;  %v415_v61 = vld [vmem:[%s3652_s23 + $0x610] sm:$0xff] }
 0x13c   : > { %2473 = vmatprep.subr.bf16.mxu0 %v3081_v62  ;;  %2596 = vmatprep.subr.bf16.mxu1 %v3083_v63  ;;  %v419_v62 = vld [vmem:[%s3652_s23 + $0x630] sm:$0xff]  ;;  %v416_v63 = vld [vmem:[%s3652_s23 + $0x618] sm:$0xff] }
 0x13d   : > { %v3145_v4 = vcombine.high %v415_v61, %v419_v62  ;;  %v3146_v12 = vcombine.low %v416_v63, %v420_v1 }
 0x13e   : > { %2465 = vmatmul.mubr.bf16.vlgmr.msra.gmra.mrb[4].mxu0 %v3766_v24  ;;  %2588 = vmatmul.mubr.bf16.vlgmr.msra.gmra.mrb[4].mxu1 %v3766_v24  ;;  %v3096_v24 = vcombine.low %v367_v9, %v371_v11  ;;  %v428_v9 = vld [vmem:[%s3652_s23 + $0x678] sm:$0xff]  ;;  %v3144_v11 = vcombine.low %v415_v61, %v419_v62 }
 0x13f   : > { %2474 = vmatpush1.bf16.msra.mxu0 %v3080_v5  ;;  %2597 = vmatpush1.bf16.msra.mxu1 %v3082_v6  ;;  %v3147_v5 = vcombine.high %v416_v63, %v420_v1  ;;  %v423_v6 = vld [vmem:[%s3652_s23 + $0x650] sm:$0xff]  ;;  %v476_v61 = vld [vmem:[%s3652_s23 + $0x7f8] sm:$0xff] }
 0x140   : > { %2475 = vmatprep.subr.bf16.mxu0 %v3089_v7  ;;  %2598 = vmatprep.subr.bf16.mxu1 %v3091_v8  ;;  %v427_v7 = vld [vmem:[%s3652_s23 + $0x670] sm:$0xff]  ;;  %v424_v8 = vld [vmem:[%s3652_s23 + $0x658] sm:$0xff] }
 0x141   : > { %2505 = vmatprep.mubr.bf16.mxu0 %v3774_v33  ;;  %2628 = vmatprep.mubr.bf16.mxu1 %v3774_v33  ;;  %v3106_v33 = vcombine.low %v376_v19, %v380_v20  ;;  %v3153_v13 = vcombine.high %v423_v6, %v427_v7  ;;  %v3152_v18 = vcombine.low %v423_v6, %v427_v7  ;;  %v484_v6 = vld [vmem:[%s3652_s23 + $0x838] sm:$0xff] }
 0x142   : > { %v3154_v19 = vcombine.low %v424_v8, %v428_v9 }
 0x143   : > { %2476 = vmatpush1.bf16.msra.mxu0 %v3088_v14  ;;  %2599 = vmatpush1.bf16.msra.mxu1 %v3090_v15  ;;  %v3155_v14 = vcombine.high %v424_v8, %v428_v9  ;;  %v431_v15 = vld [vmem:[%s3652_s23 + $0x690] sm:$0xff] }
 0x144   : > { %2477 = vmatprep.subr.bf16.mxu0 %v3097_v16  ;;  %2600 = vmatprep.subr.bf16.mxu1 %v3099_v10  ;;  %v435_v16 = vld [vmem:[%s3652_s23 + $0x6b0] sm:$0xff]  ;;  %v432_v10 = vld [vmem:[%s3652_s23 + $0x698] sm:$0xff] }
 0x145   : > { %v3161_v20 = vcombine.high %v431_v15, %v435_v16  ;;  %v3160_v26 = vcombine.low %v431_v15, %v435_v16  ;;  %v3162_v27 = vcombine.low %v432_v10, %v436_v17  ;;  %v492_v15 = vld [vmem:[%s3652_s23 + $0x878] sm:$0xff] }
 0x147   : > { %2478 = vmatpush1.bf16.msra.mxu0 %v3096_v24  ;;  %2601 = vmatpush1.bf16.msra.mxu1 %v3098_v21  ;;  %v3163_v24 = vcombine.high %v432_v10, %v436_v17  ;;  %v439_v21 = vld [vmem:[%s3652_s23 + $0x6d0] sm:$0xff] }
 0x148   : > { %2479 = vmatprep.subr.bf16.mxu0 %v3105_v22  ;;  %2602 = vmatprep.subr.bf16.mxu1 %v3107_v23  ;;  %v443_v22 = vld [vmem:[%s3652_s23 + $0x6f0] sm:$0xff]  ;;  %v440_v23 = vld [vmem:[%s3652_s23 + $0x6d8] sm:$0xff] }
 0x149   : > { %v3169_v28 = vcombine.high %v439_v21, %v443_v22  ;;  %v3168_v0 = vcombine.low %v439_v21, %v443_v22  ;;  %v3170_v34 = vcombine.low %v440_v23, %v444_v25  ;;  %v500_v21 = vld [vmem:[%s3652_s23 + $0x8b8] sm:$0xff] }
 0x14b   : > { %2480 = vmatpush1.bf16.msra.mxu0 %v3104_v29  ;;  %2603 = vmatpush1.bf16.msra.mxu1 %v3106_v33  ;;  %v3171_v29 = vcombine.high %v440_v23, %v444_v25  ;;  %v447_v33 = vld [vmem:[%s3652_s23 + $0x710] sm:$0xff] }
 0x14c   : > { %2481 = vmatprep.subr.bf16.mxu0 %v3113_v30  ;;  %2604 = vmatprep.subr.bf16.mxu1 %v3115_v31  ;;  %v451_v30 = vld [vmem:[%s3652_s23 + $0x730] sm:$0xff]  ;;  %v448_v31 = vld [vmem:[%s3652_s23 + $0x718] sm:$0xff] }
 0x14d   : > { %v3177_v35 = vcombine.high %v447_v33, %v451_v30  ;;  %v3176_v60 = vcombine.low %v447_v33, %v451_v30  ;;  %v3178_v42 = vcombine.low %v448_v31, %v452_v32  ;;  %v508_v33 = vld [vmem:[%s3652_s23 + $0x8f8] sm:$0xff] }
 0x14f   : > { %2482 = vmatpush1.bf16.msra.mxu0 %v3112_v36  ;;  %2605 = vmatpush1.bf16.msra.mxu1 %v3114_v38  ;;  %v3179_v36 = vcombine.high %v448_v31, %v452_v32  ;;  %v455_v38 = vld [vmem:[%s3652_s23 + $0x750] sm:$0xff] }
 0x150   : > { %2483 = vmatprep.subr.bf16.mxu0 %v3121_v39  ;;  %2606 = vmatprep.subr.bf16.mxu1 %v3123_v40  ;;  %v459_v39 = vld [vmem:[%s3652_s23 + $0x770] sm:$0xff]  ;;  %v456_v40 = vld [vmem:[%s3652_s23 + $0x758] sm:$0xff] }
 0x151   : > { %v3185_v43 = vcombine.high %v455_v38, %v459_v39  ;;  %v3184_v51 = vcombine.low %v455_v38, %v459_v39  ;;  %v3186_v52 = vcombine.low %v456_v40, %v460_v41 }
 0x153   : > { %2484 = vmatpush1.bf16.msra.mxu0 %v3120_v44  ;;  %2607 = vmatpush1.bf16.msra.mxu1 %v3122_v46  ;;  %v3187_v44 = vcombine.high %v456_v40, %v460_v41  ;;  %v463_v46 = vld [vmem:[%s3652_s23 + $0x790] sm:$0xff] }
 0x154   : > { %2485 = vmatprep.subr.bf16.mxu0 %v3129_v47  ;;  %2608 = vmatprep.subr.bf16.mxu1 %v3131_v49  ;;  %v467_v47 = vld [vmem:[%s3652_s23 + $0x7b0] sm:$0xff]  ;;  %v464_v49 = vld [vmem:[%s3652_s23 + $0x798] sm:$0xff] }
 0x155   : > { %v3193_v53 = vcombine.high %v463_v46, %v467_v47  ;;  %v3192_v62 = vcombine.low %v463_v46, %v467_v47  ;;  %v3194_v63 = vcombine.low %v464_v49, %v468_v50  ;;  %v519_v41 = vld [vmem:[%s3652_s23 + $0x950] sm:$0xff] }
 0x157   : > { %2486 = vmatpush1.bf16.msra.mxu0 %v3128_v55  ;;  %2609 = vmatpush1.bf16.msra.mxu1 %v3130_v57  ;;  %v3195_v55 = vcombine.high %v464_v49, %v468_v50  ;;  %v471_v57 = vld [vmem:[%s3652_s23 + $0x7d0] sm:$0xff] }
 0x158   : > { %2487 = vmatprep.subr.bf16.mxu0 %v3137_v58  ;;  %2610 = vmatprep.subr.bf16.mxu1 %v3139_v59  ;;  %v475_v58 = vld [vmem:[%s3652_s23 + $0x7f0] sm:$0xff]  ;;  %v472_v59 = vld [vmem:[%s3652_s23 + $0x7d8] sm:$0xff] }
 0x159   : > { %v3201_v1 = vcombine.high %v471_v57, %v475_v58  ;;  %v3200_v7 = vcombine.low %v471_v57, %v475_v58  ;;  %v3202_v8 = vcombine.low %v472_v59, %v476_v61  ;;  %v527_v50 = vld [vmem:[%s3652_s23 + $0x990] sm:$0xff] }
 0x15b   : > { %2488 = vmatpush1.bf16.msra.mxu0 %v3136_v2  ;;  %2611 = vmatpush1.bf16.msra.mxu1 %v3138_v3  ;;  %v3203_v2 = vcombine.high %v472_v59, %v476_v61  ;;  %v479_v3 = vld [vmem:[%s3652_s23 + $0x810] sm:$0xff] }
 0x15c   : > { %2489 = vmatprep.subr.bf16.mxu0 %v3145_v4  ;;  %2612 = vmatprep.subr.bf16.mxu1 %v3147_v5  ;;  %v483_v4 = vld [vmem:[%s3652_s23 + $0x830] sm:$0xff]  ;;  %v480_v5 = vld [vmem:[%s3652_s23 + $0x818] sm:$0xff] }
 0x15d   : > { %v3209_v9 = vcombine.high %v479_v3, %v483_v4  ;;  %v3208_v16 = vcombine.low %v479_v3, %v483_v4  ;;  %v3210_v10 = vcombine.low %v480_v5, %v484_v6  ;;  %v535_v61 = vld [vmem:[%s3652_s23 + $0x9d0] sm:$0xff] }
 0x15f   : > { %2490 = vmatpush1.bf16.msra.mxu0 %v3144_v11  ;;  %2613 = vmatpush1.bf16.msra.mxu1 %v3146_v12  ;;  %v3211_v11 = vcombine.high %v480_v5, %v484_v6  ;;  %v487_v12 = vld [vmem:[%s3652_s23 + $0x850] sm:$0xff] }
 0x160   : > { %2491 = vmatprep.subr.bf16.mxu0 %v3153_v13  ;;  %2614 = vmatprep.subr.bf16.mxu1 %v3155_v14  ;;  %v491_v13 = vld [vmem:[%s3652_s23 + $0x870] sm:$0xff]  ;;  %v488_v14 = vld [vmem:[%s3652_s23 + $0x858] sm:$0xff] }
 0x161   : > { %v3217_v17 = vcombine.high %v487_v12, %v491_v13  ;;  %v3216_v22 = vcombine.low %v487_v12, %v491_v13  ;;  %v3218_v23 = vcombine.low %v488_v14, %v492_v15 }
 0x163   : > { %2492 = vmatpush1.bf16.msra.mxu0 %v3152_v18  ;;  %2615 = vmatpush1.bf16.msra.mxu1 %v3154_v19  ;;  %v3219_v18 = vcombine.high %v488_v14, %v492_v15  ;;  %v495_v19 = vld [vmem:[%s3652_s23 + $0x890] sm:$0xff] }
 0x164   : > { %2493 = vmatprep.subr.bf16.mxu0 %v3161_v20  ;;  %2616 = vmatprep.subr.bf16.mxu1 %v3163_v24  ;;  %v499_v20 = vld [vmem:[%s3652_s23 + $0x8b0] sm:$0xff]  ;;  %v496_v24 = vld [vmem:[%s3652_s23 + $0x898] sm:$0xff] }
 0x165   : > { %v3225_v25 = vcombine.high %v495_v19, %v499_v20  ;;  %v3226_v30 = vcombine.low %v496_v24, %v500_v21 }
 0x167   : > { %2494 = vmatpush1.bf16.msra.mxu0 %v3160_v26  ;;  %2617 = vmatpush1.bf16.msra.mxu1 %v3162_v27  ;;  %v3227_v26 = vcombine.high %v496_v24, %v500_v21  ;;  %v503_v27 = vld [vmem:[%s3652_s23 + $0x8d0] sm:$0xff] }
 0x168   : > { %2495 = vmatprep.subr.bf16.mxu0 %v3169_v28  ;;  %2618 = vmatprep.subr.bf16.mxu1 %v3171_v29  ;;  %v507_v28 = vld [vmem:[%s3652_s23 + $0x8f0] sm:$0xff]  ;;  %v504_v29 = vld [vmem:[%s3652_s23 + $0x8d8] sm:$0xff] }
 0x169   : > { %v3233_v31 = vcombine.high %v503_v27, %v507_v28  ;;  %v3235_v32 = vcombine.high %v504_v29, %v508_v33  ;;  %v3232_v38 = vcombine.low %v503_v27, %v507_v28 }
 0x16b   : > { %2496 = vmatpush1.bf16.msra.mxu0 %v3168_v0  ;;  %2619 = vmatpush1.bf16.msra.mxu1 %v3170_v34  ;;  %v511_v0 = vld [vmem:[%s3652_s23 + $0x910] sm:$0xff] }
 0x16c   : > { %2497 = vmatprep.subr.bf16.mxu0 %v3177_v35  ;;  %2620 = vmatprep.subr.bf16.mxu1 %v3179_v36  ;;  %v515_v34 = vld [vmem:[%s3652_s23 + $0x930] sm:$0xff]  ;;  %v512_v35 = vld [vmem:[%s3652_s23 + $0x918] sm:$0xff] }
 0x16d   : > { %v516_v36 = vld [vmem:[%s3652_s23 + $0x938] sm:$0xff]  ;;  %v3241_v39 = vcombine.high %v511_v0, %v515_v34 }
 0x16e   : > { %v3243_v40 = vcombine.high %v512_v35, %v516_v36  ;;  %v3242_v46 = vcombine.low %v512_v35, %v516_v36 }
 0x16f   : > { %2498 = vmatpush1.bf16.msra.mxu0 %v3176_v60  ;;  %2621 = vmatpush1.bf16.msra.mxu1 %v3178_v42  ;;  %v523_v60 = vld [vmem:[%s3652_s23 + $0x970] sm:$0xff]  ;;  %v520_v42 = vld [vmem:[%s3652_s23 + $0x958] sm:$0xff] }
 0x170   : > { %2499 = vmatprep.subr.bf16.mxu0 %v3185_v43  ;;  %2622 = vmatprep.subr.bf16.mxu1 %v3187_v44  ;;  %v524_v43 = vld [vmem:[%s3652_s23 + $0x978] sm:$0xff]  ;;  %v3240_v44 = vcombine.low %v511_v0, %v515_v34  ;;  %v3249_v47 = vcombine.high %v519_v41, %v523_v60 }
 0x171   : > { %v3251_v49 = vcombine.high %v520_v42, %v524_v43  ;;  %v3250_v57 = vcombine.low %v520_v42, %v524_v43  ;;  %v219_v0 = vld [vmem:[#allocation2] sm:$0xff]  ;;  %v2745_v42 = vld [vmem:[#allocation6 + $0x8] sm:$0xff] (!%p3268_p10)  ;;  %v2746_v43 = vld [vmem:[#allocation6 + $0x10] sm:$0xff] (!%p3268_p10) }
 0x173   : > { %2500 = vmatpush1.bf16.msra.mxu0 %v3184_v51  ;;  %2623 = vmatpush1.bf16.msra.mxu1 %v3186_v52  ;;  %v531_v51 = vld [vmem:[%s3652_s23 + $0x9b0] sm:$0xff]  ;;  %v528_v52 = vld [vmem:[%s3652_s23 + $0x998] sm:$0xff] }
 0x174   : > { %2501 = vmatprep.subr.bf16.mxu0 %v3193_v53  ;;  %2624 = vmatprep.subr.bf16.mxu1 %v3195_v55  ;;  %v532_v53 = vld [vmem:[%s3652_s23 + $0x9b8] sm:$0xff]  ;;  %v3248_v55 = vcombine.low %v519_v41, %v523_v60  ;;  %v3257_v58 = vcombine.high %v527_v50, %v531_v51  ;;  %v2777_v41 = vsub.s32 (!%p3268_p10), 3, %v3693_v45  ;;  %v2781_v60 = vsub.s32 (!%p3268_p10), 4, %v3693_v45 }
 0x175   : > { %v3259_v59 = vcombine.high %v528_v52, %v532_v53  ;;  %v3258_v3 = vcombine.low %v528_v52, %v532_v53  ;;  %v2789_v52 = vsub.s32 (!%p3268_p10), 6, %v3693_v45  ;;  %v2752_v53 = vld [vmem:[#allocation6 + $0x48] sm:$0xff] (!%p3268_p10) }
 0x177   : > { %2502 = vmatpush1.bf16.msra.mxu0 %v3192_v62  ;;  %2625 = vmatpush1.bf16.msra.mxu1 %v3194_v63  ;;  %v539_v62 = vld [vmem:[%s3652_s23 + $0x9f0] sm:$0xff]  ;;  %v536_v63 = vld [vmem:[%s3652_s23 + $0x9d8] sm:$0xff] }
 0x178   : > { %2503 = vmatprep.subr.bf16.mxu0 %v3201_v1  ;;  %2626 = vmatprep.subr.bf16.mxu1 %v3203_v2  ;;  %v540_v1 = vld [vmem:[%s3652_s23 + $0x9f8] sm:$0xff]  ;;  %v3256_v2 = vcombine.low %v527_v50, %v531_v51  ;;  %v3265_v4 = vcombine.high %v535_v61, %v539_v62  ;;  %v3264_v6 = vcombine.low %v535_v61, %v539_v62 }
 0x179   : > { %v3267_v5 = vcombine.high %v536_v63, %v540_v1 }
 0x17b   : > { %2504 = vmatpush1.bf16.msra.mxu0 %v3200_v7  ;;  %2627 = vmatpush1.bf16.msra.mxu1 %v3202_v8  ;;  %v3266_v7 = vcombine.low %v536_v63, %v540_v1  ;;  %v2760_v63 = vld [vmem:[#allocation6 + $0x40] sm:$0xff] (!%p3268_p10) }
 0x17c   : > { %2514 = vmatprep.subr.bf16.mxu0 %v3209_v9  ;;  %2637 = vmatprep.subr.bf16.mxu1 %v3211_v11  ;;  %v2748_v1 = vld [vmem:[#allocation6 + $0x20] sm:$0xff] (!%p3268_p10) }
 0x17d   : > { %2843 = vrot.lane.b32.xlu1 (!%p3268_p10), %v2760_v63, %s3513_s27 }
 0x17e   : > { %2506 = vmatmul.mubr.bf16.vlgmr.msra.gmra.mrb[4].mxu0 %v3842_v37  ;;  %2629 = vmatmul.mubr.bf16.vlgmr.msra.gmra.mrb[4].mxu1 %v3842_v37  ;;  %v3224_v37 = vcombine.low %v495_v19, %v499_v20 }
 0x17f   : > { %2515 = vmatpush1.bf16.msra.mxu0 %v3208_v16  ;;  %2638 = vmatpush1.bf16.msra.mxu1 %v3210_v10 }
 0x180   : > { %2516 = vmatprep.subr.bf16.mxu0 %v3217_v17  ;;  %2639 = vmatprep.subr.bf16.mxu1 %v3219_v18 }
 0x181   : > { %2546 = vmatprep.mubr.bf16.mxu0 %v3512_v56  ;;  %2669 = vmatprep.mubr.bf16.mxu1 %v3512_v56  ;;  %v3234_v56 = vcombine.low %v504_v29, %v508_v33 }
 0x183   : > { %2517 = vmatpush1.bf16.msra.mxu0 %v3216_v22  ;;  %2640 = vmatpush1.bf16.msra.mxu1 %v3218_v23 }
 0x184   : > { %2518 = vmatprep.subr.bf16.mxu0 %v3225_v25  ;;  %2641 = vmatprep.subr.bf16.mxu1 %v3227_v26 }
 0x187   : > { %2519 = vmatpush1.bf16.msra.mxu0 %v3224_v37  ;;  %2642 = vmatpush1.bf16.msra.mxu1 %v3226_v30 }
 0x188   : > { %2520 = vmatprep.subr.bf16.mxu0 %v3233_v31  ;;  %2643 = vmatprep.subr.bf16.mxu1 %v3235_v32 }
 0x18b   : > { %2521 = vmatpush1.bf16.msra.mxu0 %v3232_v38  ;;  %2644 = vmatpush1.bf16.msra.mxu1 %v3234_v56  ;;  %v2765_v38 = vsub.s32 (!%p3268_p10), 0, %v3693_v45  ;;  %v2769_v56 = vsub.s32 (!%p3268_p10), 1, %v3693_v45 }
 0x18c   : > { %2522 = vmatprep.subr.bf16.mxu0 %v3241_v39  ;;  %2645 = vmatprep.subr.bf16.mxu1 %v3243_v40  ;;  %v2773_v39 = vsub.s32 (!%p3268_p10), 2, %v3693_v45 }
 0x18f   : > { %2523 = vmatpush1.bf16.msra.mxu0 %v3240_v44  ;;  %2646 = vmatpush1.bf16.msra.mxu1 %v3242_v46  ;;  %v2785_v44 = vsub.s32 (!%p3268_p10), 5, %v3693_v45  ;;  %v2747_v46 = vld [vmem:[#allocation6 + $0x18] sm:$0xff] (!%p3268_p10) }
 0x190   : > { %2524 = vmatprep.subr.bf16.mxu0 %v3249_v47  ;;  %2647 = vmatprep.subr.bf16.mxu1 %v3251_v49 }
 0x193   : > { %2525 = vmatpush1.bf16.msra.mxu0 %v3248_v55  ;;  %2648 = vmatpush1.bf16.msra.mxu1 %v3250_v57  ;;  %v2753_v55 = vld [vmem:[#allocation6 + $0x50] sm:$0xff] (!%p3268_p10)  ;;  %v2754_v57 = vld [vmem:[#allocation6 + $0x58] sm:$0xff] (!%p3268_p10) }
 0x194   : > { %2526 = vmatprep.subr.bf16.mxu0 %v3257_v58  ;;  %2649 = vmatprep.subr.bf16.mxu1 %v3259_v59 }
 0x197   : > { %2527 = vmatpush1.bf16.msra.mxu0 %v3256_v2  ;;  %2650 = vmatpush1.bf16.msra.mxu1 %v3258_v3  ;;  %v2793_v3 = vsub.s32 (!%p3268_p10), 7, %v3693_v45 }
 0x198   : > { %2528 = vmatprep.subr.bf16.mxu0 %v3265_v4  ;;  %2651 = vmatprep.subr.bf16.mxu1 %v3267_v5  ;;  %v2755_v5 = vld [vmem:[#allocation6 + $0x60] sm:$0xff] (!%p3268_p10) }
 0x19b   : > { %2529 = vmatpush1.bf16.msra.mxu0 %v3264_v6  ;;  %2652 = vmatpush1.bf16.msra.mxu1 %v3266_v7 }
 0x19e   : > { %2547 = vmatmul.mubr.bf16.vlgmr.msra.gmra.mrb[4].mxu0 %v3884_v48  ;;  %2670 = vmatmul.mubr.bf16.vlgmr.msra.gmra.mrb[4].mxu1 %v3884_v48 }
 0x1d1   : > { %v2302_v8 = vpop.f32.mrb[0].mxu0  ;;  %v2425_v9 = vpop.f32.mrb[0].mxu1 }
 0x1d2   : > { %v2304_v11 = vpop.f32.mrb[1].mxu0  ;;  %v2427_v13 = vpop.f32.mrb[1].mxu1 }
 0x1d3   : > { %v2686_v12 = vcombine.low %v2302_v8, %v2304_v11  ;;  %v2306_v14 = vpop.f32.mrb[2].mxu0  ;;  %v2687_v15 = vcombine.low %v2425_v9, %v2427_v13  ;;  %v2429_v16 = vpop.f32.mrb[2].mxu1  ;;  %v2761_v11 = vld [vmem:[#allocation6 + $0x88] sm:$0xff] (!%p3268_p10) }
 0x1d4   : > { %v2307_v10 = vpop.f32.mrb[3].mxu0  ;;  %v2430_v18 = vpop.f32.mrb[3].mxu1  ;;  %v2756_v14 = vld [vmem:[#allocation6 + $0x68] sm:$0xff] (!%p3268_p10)  ;;  %2845 = vrot.lane.b32.xlu1 (!%p3268_p10), %v2761_v11, %s3513_s27 }
 0x1d5   : > { %v2696_v17 = vrot.slane %v2686_v12, %v3700_v54  ;;  %v2703_v19 = vrot.slane %v2687_v15, %v3700_v54  ;;  %v2749_v12 = vld [vmem:[#allocation6 + $0x28] sm:$0xff] (!%p3268_p10)  ;;  %v2750_v18 = vld [vmem:[#allocation6 + $0x30] sm:$0xff] (!%p3268_p10) }
 0x1d7   : > { %v2718_v20 = vcombine.low %v2696_v17, %v2703_v19 }
 0x1d9   : > { %v2726_v31 = vrot.slane %v2718_v20, %v3700_v54  ;;  %v2757_v20 = vld [vmem:[#allocation6 + $0x70] sm:$0xff] (!%p3268_p10) }
 0x271   : > { %v2548_v24 = vpop.f32.mrb[4].mxu0  ;;  %v2671_v21 = vpop.f32.mrb[4].mxu1 }
 0x272   : > { %v2550_v22 = vpop.f32.mrb[5].mxu0  ;;  %v2673_v48 = vpop.f32.mrb[5].mxu1 }
 0x273   : > { %v2688_v23 = vcombine.low %v2548_v24, %v2550_v22  ;;  %v2552_v25 = vpop.f32.mrb[6].mxu0  ;;  %v2689_v26 = vcombine.low %v2671_v21, %v2673_v48  ;;  %v2675_v27 = vpop.f32.mrb[6].mxu1  ;;  %v2758_v48 = vld [vmem:[#allocation6 + $0x78] sm:$0xff] (!%p3268_p10) }
 0x274   : > { %v2553_v28 = vpop.f32.mrb[7].mxu0  ;;  %v2676_v33 = vpop.f32.mrb[7].mxu1 }
 0x275   : > { %v2710_v29 = vrot.slane %v2688_v23, %v3700_v54  ;;  %v2717_v37 = vrot.slane %v2689_v26, %v3700_v54  ;;  %v2751_v23 = vld [vmem:[#allocation6 + $0x38] sm:$0xff] (!%p3268_p10) }
 0x277   : > { %v2719_v30 = vcombine.low %v2710_v29, %v2717_v37  ;;  %v2759_v29 = vld [vmem:[#allocation6 + $0x80] sm:$0xff] (!%p3268_p10) }
 0x279   : > { %v2733_v32 = vrot.slane %v2719_v30, %v3700_v54  ;;  %2741 = sbr.rel (%p3268_p10) target bundleno = 835 (0x343), region = 48  ;;  %v2744_v54 = vld [vmem:[#allocation6] sm:$0xff] (!%p3268_p10) }
 0x27b   : > { %v2734_v34 = vcombine.low %v2726_v31, %v2733_v32 }
 0x27d   : > { %v2736_v35 = vadd.f32 %v2734_v34, %v219_v0 }
 0x27f   : > { %2737 = vst [vmem:[#allocation2] sm:$0xff] %v2736_v35 }
 0x286   : > { %v2742_v36 = vld [vmem:[#allocation2] sm:$0xff] }
 0x287   : > { %v2743_v40 = vmax.f32 %v2742_v36, 0.0 }
 0x289   : > { %v2766_v47 = vrot.slane %v2743_v40, %v2765_v38  ;;  %v2770_v49 = vrot.slane %v2743_v40, %v2769_v56  ;;  %v2774_v50 = vrot.slane %v2743_v40, %v2773_v39  ;;  %v2778_v51 = vrot.slane %v2743_v40, %v2777_v41  ;;  %v2844_v39 = vpop.permute.xlu1 %2843 }
 0x28a   : > { %v2782_v58 = vrot.slane %v2743_v40, %v2781_v60  ;;  %v2786_v2 = vrot.slane %v2743_v40, %v2785_v44  ;;  %v2790_v13 = vrot.slane %v2743_v40, %v2789_v52  ;;  %v2794_v19 = vrot.slane %v2743_v40, %v2793_v3 }
 0x28b   : > { %v2803_v59 = vmul.f32 %v2766_v47, %v2744_v54  ;;  %v2804_v61 = vmul.f32 %v2770_v49, %v2745_v42  ;;  %v2805_v62 = vmul.f32 %v2774_v50, %v2746_v43  ;;  %v2806_v4 = vmul.f32 %v2778_v51, %v2747_v46 }
 0x28c   : > { %v2811_v7 = vmul.f32 %v2766_v47, %v2752_v53  ;;  %v2812_v8 = vmul.f32 %v2770_v49, %v2753_v55  ;;  %v2813_v9 = vmul.f32 %v2774_v50, %v2754_v57  ;;  %v2807_v15 = vmul.f32 %v2782_v58, %v2748_v1 }
 0x28d   : > { %v2819_v6 = vadd.f32 %v2804_v61, %v2803_v59  ;;  %v2814_v10 = vmul.f32 %v2778_v51, %v2755_v5  ;;  %v2808_v45 = vmul.f32 %v2786_v2, %v2749_v12  ;;  %v2815_v21 = vmul.f32 %v2782_v58, %v2756_v14  ;;  %v2846_v42 = vpop.permute.xlu1 %2845 }
 0x28e   : > { %v2828_v17 = vadd.f32 %v2812_v8, %v2811_v7  ;;  %v2809_v25 = vmul.f32 %v2790_v13, %v2750_v18  ;;  %v2816_v27 = vmul.f32 %v2786_v2, %v2757_v20  ;;  %v2810_v33 = vmul.f32 %v2794_v19, %v2751_v23 }
 0x28f   : > { %v2820_v16 = vadd.f32 %v2819_v6, %v2805_v62  ;;  %v2817_v30 = vmul.f32 %v2790_v13, %v2758_v48  ;;  %v2818_v0 = vmul.f32 %v2794_v19, %v2759_v29 }
 0x290   : > { %v2829_v22 = vadd.f32 %v2828_v17, %v2813_v9 }
 0x291   : > { %v2821_v24 = vadd.f32 %v2820_v16, %v2806_v4 }
 0x292   : > { %v2830_v28 = vadd.f32 %v2829_v22, %v2814_v10 }
 0x293   : > { %v2822_v26 = vadd.f32 %v2821_v24, %v2807_v15 }
 0x294   : > { %v2831_v31 = vadd.f32 %v2830_v28, %v2815_v21 }
 0x295   : > { %v2823_v37 = vadd.f32 %v2822_v26, %v2808_v45 }
 0x296   : > { %v2832_v34 = vadd.f32 %v2831_v31, %v2816_v27 }
 0x297   : > { %v2824_v32 = vadd.f32 %v2823_v37, %v2809_v25 }
 0x298   : > { %v2833_v36 = vadd.f32 %v2832_v34, %v2817_v30 }
 0x299   : > { %v2825_v35 = vadd.f32 %v2824_v32, %v2810_v33 }
 0x29a   : > { %v2834_v38 = vadd.f32 %v2833_v36, %v2818_v0 }
 0x29b   : > { %2826 = vadd.xlane.f32.xlu0 %v2825_v35 }
 0x29f   : > { %2835 = vadd.xlane.f32.xlu0 %v2834_v38 }
 0x328   : > { %v2827_v56 = vpop.xlane.xlu0 %2826 }
 0x329   : > { %v2837_v40 = vadd.f32 %v2827_v56, %v2760_v63 }
 0x32b   : > { %v2839_v41 = vmax.f32 %v2837_v40, 0.0 }
 0x32c   : > { %v2836_v60 = vpop.xlane.xlu0 %2835 }
 0x32d   : > { %v2838_v54 = vadd.f32 %v2836_v60, %v2761_v11  ;;  %v2849_v43 = vmul.f32 %v2844_v39, %v2839_v41 }
 0x32f   : > { %v2840_v44 = vmax.f32 %v2838_v54, 0.0  ;;  %v2852_v47 = vsel %vm2851_vm0, %v2849_v43, 0.0 }
 0x331   : > { %v2850_v46 = vmul.f32 %v2846_v42, %v2840_v44 }
 0x333   : > { %v2853_v49 = vsel %vm2851_vm0, %v2850_v46, 0.0 }
 0x334   : > { %v2854_v50 = vadd.f32 %v2853_v49, %v2852_v47 }
 0x336   : > { %v2855_v51 = vrot.slane %v2854_v50, 4 }
 0x338   : > { %v2856_v52 = vadd.f32 %v2855_v51, %v2854_v50 }
 0x33a   : > { %v2857_v53 = vrot.slane %v2856_v52, 2 }
 0x33c   : > { %v2858_v55 = vadd.f32 %v2857_v53, %v2856_v52 }
 0x33e   : > { %v2859_v57 = vrot.slane %v2858_v55, 1 }
 0x340   : > { %v2860_v58 = vadd.f32 %v2859_v57, %v2858_v55 }
 0x342   : > { %2862 = vst.msk [vmem:[#allocation8] sm:$0x1] %vm2861_vm1, %v2860_v58 }
 0x343 PF: > { %p3331_p1 = scmp.eq.s32.totalorder %s3554_s16, 3  ;;  %s3514_s28 = smov [#allocation8]  }
 0x344   : > { %s2870_s29 = sshll.u32 %s3514_s28, 4  ;;  %s2871_s29 = int_to_ptr.vmem [resolvable:$true] %s2870_s29 }
 0x345   : > { %s3434_s30 = scalar_lea.vmem %s2871_s29, 16  ;;  %s3440_s4 = scalar_lea.vmem %s2871_s29, 32 }
 0x346   : > { %p3435_p4 = scmp.ne.s32.totalorder %s2871_s29, %s3434_s30  ;;  %p3441_p12 = scmp.lt.s32.totalorder %s2871_s29, %s2871_s29 }
 0x347   : > { %p3442_p0 = scmp.lt.s32.totalorder %s3440_s4, %s3434_s30 }
 0x348   : > { %p3436_p5 = pnand %p3435_p4, %p3331_p1 }
 0x349   : > { %p3443_p2 = por %p3442_p0, %p3441_p12 }
 0x34a   : > { %p3437_p8 = pneg %p3436_p5 }
 0x34c   : > { %p3444_p11 = pnand %p3443_p2, %p3437_p8 }
 0x34e   : > { %3447 = shalt.err (!%p3444_p11)
}
 0x34f   : > { %s3448_s7 = scalar_lea.hbm %s4108_s3, 16 }
 0x350   : > { %p3449_p13 = scmp.ne.s32.totalorder %s4108_s3, %s3448_s7  ;;  %p3454_p7 = scmp.lt.u32.totalorder %s3448_s7, %s4108_s3 }
 0x352   : > { %p3450_p3 = pnand %p3449_p13, %p3331_p1 }
 0x354   : > { %p3451_p6 = pneg %p3450_p3 }
 0x356   : > { %p3456_p9 = pnand %p3454_p7, %p3451_p6 }
 0x358   : > { %3459 = shalt.err (!%p3456_p9)
}
 0x359   : > { %3317 = dma.vmem_to_hbm [thread:$0]  (%p3331_p1), %s2871_s29, 16, %s4108_s3, [#allocation5]  }
 0x35a   : > { %3485 = dma.done.wait (%p3331_p1), [#allocation5], 16  }
 0x35b   : > { %3487 = vsyncadd (%p3331_p1), [#allocation5], 4294967280 }
 0x35c PF: > { %p15_p10 = scmp.ge.s32.totalorder %s3580_s22, 6   ;;  %s4121_s12 = smov %s3494_s13 }
 0x35d   : > { %s4122_s13 = smov %s3498_s14  ;;  %s4123_s14 = smov %s3606_s10 }
 0x35e   : > { %s4124_s15 = smov %s3580_s22  ;;  %17 = sbr.rel (!%p15_p10) target bundleno = 5 (0x5), region = 84 }
 0x365   :  { %2883 = vsyncpa [#allocation4], 1 }
 0x366   :  { %2885 = vsyncpa [#allocation4 + $0x1], 1 }
 0x367   :  { %2886 = vsyncpa [#allocation7], 1 }
 0x368   :  { %2887 = vsyncpa [#allocation5], 1 }
 0x369   :  { %2889 = vsyncpa [#allocation5 + $0x1], 1 }

</bundles_post_ra>
